<compile_context>
chip_gen: v7x
topology: tpu7x:2x2x1
jax: 0.10.0
libtpu: 0.0.40
codegen_flags: <defaults>
</compile_context>

<pallas_src>
import jax
import jax.numpy as jnp
from jax.experimental import pallas as pl
from jax.experimental.pallas import tpu as pltpu

GLOVE_DIM = 100
HIDDEN_UNITS = 64
MATMUL_DTYPE = jnp.bfloat16   # MXU operand dtype (f32 accumulation regardless)


def _gru_kernel(x_ref, wih_ref, whh_ref, bih_ref, bhh_ref, wlin_ref, blin_ref,
                out_ref, h_ref):
    """One grid step == one time-chunk of the GRU.

    x_ref   : (B, Tc, D)   batch-first chunk of the input (f32)
    wih_ref : (D, 3Hp)     fused, gate-padded input->hidden weights [r|z|n]
    whh_ref : (Hp, 3Hp)    fused, gate-padded hidden->hidden weights
    bih_ref : (1, 3Hp)     fused input bias (padded lanes are 0)
    bhh_ref : (1, 3Hp)     fused hidden bias (padded lanes are 0)
    wlin_ref: (1, Hp)      final linear weight (padded lanes are 0)
    blin_ref: (1, 1)       final linear bias, SMEM scalar
    out_ref : (B, 1)       sigmoid(linear(h_T))
    h_ref   : (B, Hp)      VMEM scratch carrying h across chunks (f32)
    """
    B, Tc, D = x_ref.shape
    Hp = h_ref.shape[1]

    c = pl.program_id(0)
    n_chunks = pl.num_programs(0)

    @pl.when(c == 0)
    def _():
        h_ref[...] = jnp.zeros_like(h_ref)

    # --- Phase 1: hoisted input projection, one fused matmul for the chunk --
    x_flat = x_ref[...].reshape(B * Tc, D).astype(wih_ref.dtype)
    gi = jnp.dot(x_flat, wih_ref[...],
                 preferred_element_type=jnp.float32) + bih_ref[...]
    gi = gi.reshape(B, Tc, 3 * Hp)                           # (B, Tc, 3Hp) f32

    # Loop-invariant values hoisted out of the unrolled recurrence.
    w_hh = whh_ref[...]                                      # (Hp, 3Hp) bf16
    b_hh = jnp.broadcast_to(bhh_ref[...], (B, 3 * Hp))       # (B, 3Hp)  f32

    # --- Phase 2: sequential GRU recurrence, fully unrolled (static Tc) -----
    h = h_ref[...]                                           # (B, Hp) f32
    for t in range(Tc):
        gi_t = gi[:, t, :]                                   # (B, 3Hp)
        gh = jnp.dot(h.astype(w_hh.dtype), w_hh,
                     preferred_element_type=jnp.float32) + b_hh
        # Fused r/z sigmoid on the 128-aligned [0:2Hp] slab.
        rz = jax.nn.sigmoid(gi_t[:, :2 * Hp] + gh[:, :2 * Hp])
        r = rz[:, :Hp]
        z = rz[:, Hp:]
        n = jnp.tanh(gi_t[:, 2 * Hp:] + r * gh[:, 2 * Hp:])  # b_hh_n inside r*
        h = (1.0 - z) * n + z * h
    h_ref[...] = h

    # --- Final Linear(H, 1) + sigmoid, only after the last chunk ------------
    @pl.when(c == n_chunks - 1)
    def _():
        logits = jnp.sum(h * wlin_ref[...], axis=-1, keepdims=True) \
            + blin_ref[0, 0]
        out_ref[...] = jax.nn.sigmoid(logits)


def _pick_time_chunk(T, max_chunk=16):
    """Time-chunk per grid step: whole sequence if small, else a
    multiple-of-8 divisor of T.  Capped at 16 steps so the static unroll and
    the live gi value stay well under the 64-vreg file."""
    if T <= max_chunk:
        return T
    best = T
    for tc in range(8, max_chunk + 1, 8):
        if T % tc == 0:
            best = tc
    return best


@jax.jit
def rnn_forward(x, w_ih_p, w_hh_p, b_ih_p, b_hh_p, w_lin_p, b_lin):
    """x: (B, T, D) batch-first float32, like the PyTorch module.
    Weights are pre-fused / gate-padded / pre-cast (see pack_params).
    Dropout is identity in eval mode (inference forward pass)."""
    B, T, D = x.shape
    Hp = w_hh_p.shape[0]
    Tc = _pick_time_chunk(T)
    n_chunks = T // Tc

    grid_spec = pltpu.PrefetchScalarGridSpec(
        num_scalar_prefetch=0,
        grid=(n_chunks,),
        in_specs=[
            pl.BlockSpec((B, Tc, D), lambda c: (0, c, 0)),      # x chunk
            pl.BlockSpec((D, 3 * Hp), lambda c: (0, 0)),        # fused W_ih
            pl.BlockSpec((Hp, 3 * Hp), lambda c: (0, 0)),       # fused W_hh
            pl.BlockSpec((1, 3 * Hp), lambda c: (0, 0)),        # fused b_ih
            pl.BlockSpec((1, 3 * Hp), lambda c: (0, 0)),        # fused b_hh
            pl.BlockSpec((1, Hp), lambda c: (0, 0)),            # linear weight
            pl.BlockSpec(memory_space=pltpu.MemorySpace.SMEM),  # linear bias
        ],
        out_specs=pl.BlockSpec((B, 1), lambda c: (0, 0)),
        scratch_shapes=[pltpu.VMEM((B, Hp), jnp.float32)],
    )

    return pl.pallas_call(
        _gru_kernel,
        out_shape=jax.ShapeDtypeStruct((B, 1), jnp.float32),
        grid_spec=grid_spec,
        compiler_params=pltpu.CompilerParams(
            dimension_semantics=("arbitrary",)),   # sequential recurrence
    )(x, w_ih_p, w_hh_p, b_ih_p, b_hh_p, w_lin_p, b_lin)


def make_params(key, D=GLOVE_DIM, H=HIDDEN_UNITS):
    """PyTorch-style uniform(-1/sqrt(H), 1/sqrt(H)) init, gate order [r, z, n].
    Returns the *unpadded* f32 parameters (as the nn.Module would hold them,
    already fused over gates and pre-transposed for right-multiplication)."""
    ks = jax.random.split(key, 6)
    bound = 1.0 / jnp.sqrt(jnp.float32(H))
    w_ih = jax.random.uniform(ks[0], (D, 3 * H), jnp.float32, -bound, bound)
    w_hh = jax.random.uniform(ks[1], (H, 3 * H), jnp.float32, -bound, bound)
    b_ih = jax.random.uniform(ks[2], (1, 3 * H), jnp.float32, -bound, bound)
    b_hh = jax.random.uniform(ks[3], (1, 3 * H), jnp.float32, -bound, bound)
    w_lin = jax.random.uniform(ks[4], (1, H), jnp.float32, -bound, bound)
    b_lin = jax.random.uniform(ks[5], (1, 1), jnp.float32, -bound, bound)
    return w_ih, w_hh, b_ih, b_hh, w_lin, b_lin


def pack_params(w_ih, w_hh, b_ih, b_hh, w_lin, b_lin,
                matmul_dtype=MATMUL_DTYPE):
    """Zero-pad each gate from H to Hp=ceil128(H) so gates sit at 128-aligned
    lane offsets, pad the hidden contraction dim, and pre-cast the MXU weights.
    Padded columns/rows/bias lanes are 0, so padded hidden lanes stay exactly
    zero through the GRU and the final reduction is unchanged."""
    D, threeH = w_ih.shape
    H = threeH // 3
    Hp = ((H + 127) // 128) * 128

    def pad_gates(w):  # (..., 3H) -> (..., 3Hp), each gate zero-padded
        parts = [w[..., g * H:(g + 1) * H] for g in range(3)]
        pad = [(0, 0)] * (w.ndim - 1) + [(0, Hp - H)]
        return jnp.concatenate([jnp.pad(p, pad) for p in parts], axis=-1)

    w_ih_p = pad_gates(w_ih).astype(matmul_dtype)                    # (D, 3Hp)
    w_hh_p = jnp.pad(pad_gates(w_hh),
                     ((0, Hp - H), (0, 0))).astype(matmul_dtype)     # (Hp,3Hp)
    b_ih_p = pad_gates(b_ih)                                         # (1, 3Hp)
    b_hh_p = pad_gates(b_hh)                                         # (1, 3Hp)
    w_lin_p = jnp.pad(w_lin, ((0, 0), (0, Hp - H)))                  # (1, Hp)
    return w_ih_p, w_hh_p, b_ih_p, b_hh_p, w_lin_p, b_lin


def reference_forward(x, w_ih, w_hh, b_ih, b_hh, w_lin, b_lin,
                      matmul_dtype=MATMUL_DTYPE):
    """Pure-JAX reference of the same GRU semantics (PyTorch gate order/math),
    mirroring the kernel's MXU operand dtype so the comparison is tight."""
    B, T, D = x.shape
    H = w_hh.shape[0]
    w_ih_c = w_ih.astype(matmul_dtype)
    w_hh_c = w_hh.astype(matmul_dtype)

    def step(h, x_t):
        gi = jnp.dot(x_t.astype(matmul_dtype), w_ih_c,
                     preferred_element_type=jnp.float32) + b_ih
        gh = jnp.dot(h.astype(matmul_dtype), w_hh_c,
                     preferred_element_type=jnp.float32) + b_hh
        r = jax.nn.sigmoid(gi[:, :H] + gh[:, :H])
        z = jax.nn.sigmoid(gi[:, H:2 * H] + gh[:, H:2 * H])
        n = jnp.tanh(gi[:, 2 * H:] + r * gh[:, 2 * H:])
        return (1.0 - z) * n + z * h, None

    h0 = jnp.zeros((B, H), jnp.float32)
    h_last, _ = jax.lax.scan(step, h0, jnp.transpose(x, (1, 0, 2)))
    logits = jnp.sum(h_last * w_lin, axis=-1, keepdims=True) + b_lin
    return jax.nn.sigmoid(logits)


if __name__ == "__main__":
    key = jax.random.PRNGKey(0)
    k_x, k_p = jax.random.split(key)

    B, T, D, H = 2, 8, GLOVE_DIM, HIDDEN_UNITS
    x = jax.random.normal(k_x, (B, T, D), jnp.float32)   # batch-first (B, T, D)

    raw_params = make_params(k_p, D, H)
    packed_params = pack_params(*raw_params, matmul_dtype=MATMUL_DTYPE)

    out = jax.block_until_ready(rnn_forward(x, *packed_params))

    ref = reference_forward(x, *raw_params, matmul_dtype=MATMUL_DTYPE)
    assert out.shape == (B, 1)
    assert jnp.allclose(out, ref, atol=2e-3, rtol=2e-3), (out, ref)

    print("KERNEL_OK")
</pallas_src>

<mosaic_0001>
module attributes {stable_mosaic.version = 11 : i64} {
  func.func @_gru_kernel(%arg0: i32, %arg1: memref<2x8x100xf32, #tpu.memory_space<vmem>>, %arg2: memref<100x384xbf16, #tpu.memory_space<vmem>>, %arg3: memref<128x384xbf16, #tpu.memory_space<vmem>>, %arg4: memref<1x384xf32, #tpu.memory_space<vmem>>, %arg5: memref<1x384xf32, #tpu.memory_space<vmem>>, %arg6: memref<1x128xf32, #tpu.memory_space<vmem>>, %arg7: memref<1x1xf32, #tpu.memory_space<smem>>, %arg8: memref<2x1xf32, #tpu.memory_space<vmem>>, %arg9: memref<2x128xf32, #tpu.memory_space<vmem>>) attributes {dimension_semantics = [#tpu.dimension_semantics<arbitrary>], iteration_bounds = array<i64: 1>, scalar_prefetch = 0 : i64, scratch_operands = 1 : i64, tpu.core_type = #tpu.core_type<tc>, window_params = [{transform_indices = @transform_0, window_bounds = array<i64: 2, 8, 100>}, {pipeline_mode = #tpu.pipeline_mode<synchronous>, transform_indices = @transform_1, window_bounds = array<i64: 100, 384>}, {pipeline_mode = #tpu.pipeline_mode<synchronous>, transform_indices = @transform_2, window_bounds = array<i64: 128, 384>}, {pipeline_mode = #tpu.pipeline_mode<synchronous>, transform_indices = @transform_3, window_bounds = array<i64: 1, 384>}, {pipeline_mode = #tpu.pipeline_mode<synchronous>, transform_indices = @transform_4, window_bounds = array<i64: 1, 384>}, {pipeline_mode = #tpu.pipeline_mode<synchronous>, transform_indices = @transform_5, window_bounds = array<i64: 1, 128>}, {transform_indices = @transform_6, window_bounds = array<i64: 1, 1>}, {pipeline_mode = #tpu.pipeline_mode<synchronous>, transform_indices = @transform_7, window_bounds = array<i64: 2, 1>}]} {
    %c0_i32 = arith.constant 0 : i32
    %0 = arith.cmpi eq, %arg0, %c0_i32 : i32
    %1 = arith.extui %0 : i1 to i32
    %c0_i32_0 = arith.constant 0 : i32
    %2 = arith.cmpi ne, %1, %c0_i32_0 : i32
    scf.if %2 {
      %cst_41 = arith.constant 0.000000e+00 : f32
      %221 = vector.broadcast %cst_41 : f32 to vector<2x128xf32>
      %c0_42 = arith.constant 0 : index
      %c0_43 = arith.constant 0 : index
      %222 = vector.load %arg9[%c0_42, %c0_43] : memref<2x128xf32, #tpu.memory_space<vmem>>, vector<2x128xf32>
      tpu.vector_store %arg9[%c0_42, %c0_43], %221 {strides = array<i32>} : memref<2x128xf32, #tpu.memory_space<vmem>>, vector<2x128xf32>,
    } else {
    }
    %c0 = arith.constant 0 : index
    %c0_1 = arith.constant 0 : index
    %c0_2 = arith.constant 0 : index
    %3 = vector.load %arg1[%c0, %c0_1, %c0_2] : memref<2x8x100xf32, #tpu.memory_space<vmem>>, vector<2x8x100xf32>
    %4 = vector.shape_cast %3 : vector<2x8x100xf32> to vector<16x100xf32>
    %5 = arith.truncf %4 : vector<16x100xf32> to vector<16x100xbf16>
    %c0_3 = arith.constant 0 : index
    %c0_4 = arith.constant 0 : index
    %6 = vector.load %arg2[%c0_3, %c0_4] : memref<100x384xbf16, #tpu.memory_space<vmem>>, vector<100x384xbf16>
    %cst = arith.constant dense<0.000000e+00> : vector<16x384xf32>
    %7 = tpu.matmul %5, %6, %cst {dimension_numbers = #tpu.dot_dimension_numbers<[1], [0], [0], [1], [0, 0, 1, 1], [], []>} : vector<16x100xbf16>, vector<100x384xbf16>, vector<16x384xf32> -> vector<16x384xf32>
    %c0_5 = arith.constant 0 : index
    %c0_6 = arith.constant 0 : index
    %8 = vector.load %arg4[%c0_5, %c0_6] : memref<1x384xf32, #tpu.memory_space<vmem>>, vector<1x384xf32>
    %9 = vector.broadcast %8 : vector<1x384xf32> to vector<16x384xf32>
    %10 = arith.addf %7, %9 : vector<16x384xf32>
    %11 = vector.shape_cast %10 : vector<16x384xf32> to vector<2x8x384xf32>
    %c0_7 = arith.constant 0 : index
    %c0_8 = arith.constant 0 : index
    %12 = vector.load %arg3[%c0_7, %c0_8] : memref<128x384xbf16, #tpu.memory_space<vmem>>, vector<128x384xbf16>
    %c0_9 = arith.constant 0 : index
    %c0_10 = arith.constant 0 : index
    %13 = vector.load %arg5[%c0_9, %c0_10] : memref<1x384xf32, #tpu.memory_space<vmem>>, vector<1x384xf32>
    %14 = vector.shape_cast %13 : vector<1x384xf32> to vector<1x384xf32>
    %15 = vector.broadcast %14 : vector<1x384xf32> to vector<2x384xf32>
    %c0_11 = arith.constant 0 : index
    %c0_12 = arith.constant 0 : index
    %16 = vector.load %arg9[%c0_11, %c0_12] : memref<2x128xf32, #tpu.memory_space<vmem>>, vector<2x128xf32>
    %17 = vector.extract_strided_slice %11 {offsets = [0, 0, 0], sizes = [2, 1, 384], strides = [1, 1, 1]} : vector<2x8x384xf32> to vector<2x1x384xf32>
    %18 = vector.shape_cast %17 : vector<2x1x384xf32> to vector<2x384xf32>
    %19 = arith.truncf %16 : vector<2x128xf32> to vector<2x128xbf16>
    %cst_13 = arith.constant dense<0.000000e+00> : vector<2x384xf32>
    %20 = tpu.matmul %19, %12, %cst_13 {dimension_numbers = #tpu.dot_dimension_numbers<[1], [0], [0], [1], [0, 0, 1, 1], [], []>} : vector<2x128xbf16>, vector<128x384xbf16>, vector<2x384xf32> -> vector<2x384xf32>
    %21 = arith.addf %20, %15 : vector<2x384xf32>
    %22 = vector.extract_strided_slice %18 {offsets = [0, 0], sizes = [2, 256], strides = [1, 1]} : vector<2x384xf32> to vector<2x256xf32>
    %23 = vector.extract_strided_slice %21 {offsets = [0, 0], sizes = [2, 256], strides = [1, 1]} : vector<2x384xf32> to vector<2x256xf32>
    %24 = arith.addf %22, %23 : vector<2x256xf32>
    %25 = arith.negf %24 : vector<2x256xf32>
    %26 = math.exp %25 : vector<2x256xf32>
    %cst_14 = arith.constant 1.000000e+00 : f32
    %27 = vector.broadcast %cst_14 : f32 to vector<2x256xf32>
    %28 = arith.addf %27, %26 : vector<2x256xf32>
    %29 = arith.divf %27, %28 : vector<2x256xf32>
    %30 = vector.extract_strided_slice %29 {offsets = [0, 0], sizes = [2, 128], strides = [1, 1]} : vector<2x256xf32> to vector<2x128xf32>
    %31 = vector.extract_strided_slice %29 {offsets = [0, 128], sizes = [2, 128], strides = [1, 1]} : vector<2x256xf32> to vector<2x128xf32>
    %32 = vector.extract_strided_slice %18 {offsets = [0, 256], sizes = [2, 128], strides = [1, 1]} : vector<2x384xf32> to vector<2x128xf32>
    %33 = vector.extract_strided_slice %21 {offsets = [0, 256], sizes = [2, 128], strides = [1, 1]} : vector<2x384xf32> to vector<2x128xf32>
    %34 = arith.mulf %30, %33 : vector<2x128xf32>
    %35 = arith.addf %32, %34 : vector<2x128xf32>
    %36 = math.tanh %35 : vector<2x128xf32>
    %cst_15 = arith.constant 1.000000e+00 : f32
    %37 = vector.broadcast %cst_15 : f32 to vector<2x128xf32>
    %38 = arith.subf %37, %31 : vector<2x128xf32>
    %39 = arith.mulf %38, %36 : vector<2x128xf32>
    %40 = arith.mulf %31, %16 : vector<2x128xf32>
    %41 = arith.addf %39, %40 : vector<2x128xf32>
    %42 = vector.extract_strided_slice %11 {offsets = [0, 1, 0], sizes = [2, 1, 384], strides = [1, 1, 1]} : vector<2x8x384xf32> to vector<2x1x384xf32>
    %43 = vector.shape_cast %42 : vector<2x1x384xf32> to vector<2x384xf32>
    %44 = arith.truncf %41 : vector<2x128xf32> to vector<2x128xbf16>
    %cst_16 = arith.constant dense<0.000000e+00> : vector<2x384xf32>
    %45 = tpu.matmul %44, %12, %cst_16 {dimension_numbers = #tpu.dot_dimension_numbers<[1], [0], [0], [1], [0, 0, 1, 1], [], []>} : vector<2x128xbf16>, vector<128x384xbf16>, vector<2x384xf32> -> vector<2x384xf32>
    %46 = arith.addf %45, %15 : vector<2x384xf32>
    %47 = vector.extract_strided_slice %43 {offsets = [0, 0], sizes = [2, 256], strides = [1, 1]} : vector<2x384xf32> to vector<2x256xf32>
    %48 = vector.extract_strided_slice %46 {offsets = [0, 0], sizes = [2, 256], strides = [1, 1]} : vector<2x384xf32> to vector<2x256xf32>
    %49 = arith.addf %47, %48 : vector<2x256xf32>
    %50 = arith.negf %49 : vector<2x256xf32>
    %51 = math.exp %50 : vector<2x256xf32>
    %cst_17 = arith.constant 1.000000e+00 : f32
    %52 = vector.broadcast %cst_17 : f32 to vector<2x256xf32>
    %53 = arith.addf %52, %51 : vector<2x256xf32>
    %54 = arith.divf %52, %53 : vector<2x256xf32>
    %55 = vector.extract_strided_slice %54 {offsets = [0, 0], sizes = [2, 128], strides = [1, 1]} : vector<2x256xf32> to vector<2x128xf32>
    %56 = vector.extract_strided_slice %54 {offsets = [0, 128], sizes = [2, 128], strides = [1, 1]} : vector<2x256xf32> to vector<2x128xf32>
    %57 = vector.extract_strided_slice %43 {offsets = [0, 256], sizes = [2, 128], strides = [1, 1]} : vector<2x384xf32> to vector<2x128xf32>
    %58 = vector.extract_strided_slice %46 {offsets = [0, 256], sizes = [2, 128], strides = [1, 1]} : vector<2x384xf32> to vector<2x128xf32>
    %59 = arith.mulf %55, %58 : vector<2x128xf32>
    %60 = arith.addf %57, %59 : vector<2x128xf32>
    %61 = math.tanh %60 : vector<2x128xf32>
    %cst_18 = arith.constant 1.000000e+00 : f32
    %62 = vector.broadcast %cst_18 : f32 to vector<2x128xf32>
    %63 = arith.subf %62, %56 : vector<2x128xf32>
    %64 = arith.mulf %63, %61 : vector<2x128xf32>
    %65 = arith.mulf %56, %41 : vector<2x128xf32>
    %66 = arith.addf %64, %65 : vector<2x128xf32>
    %67 = vector.extract_strided_slice %11 {offsets = [0, 2, 0], sizes = [2, 1, 384], strides = [1, 1, 1]} : vector<2x8x384xf32> to vector<2x1x384xf32>
    %68 = vector.shape_cast %67 : vector<2x1x384xf32> to vector<2x384xf32>
    %69 = arith.truncf %66 : vector<2x128xf32> to vector<2x128xbf16>
    %cst_19 = arith.constant dense<0.000000e+00> : vector<2x384xf32>
    %70 = tpu.matmul %69, %12, %cst_19 {dimension_numbers = #tpu.dot_dimension_numbers<[1], [0], [0], [1], [0, 0, 1, 1], [], []>} : vector<2x128xbf16>, vector<128x384xbf16>, vector<2x384xf32> -> vector<2x384xf32>
    %71 = arith.addf %70, %15 : vector<2x384xf32>
    %72 = vector.extract_strided_slice %68 {offsets = [0, 0], sizes = [2, 256], strides = [1, 1]} : vector<2x384xf32> to vector<2x256xf32>
    %73 = vector.extract_strided_slice %71 {offsets = [0, 0], sizes = [2, 256], strides = [1, 1]} : vector<2x384xf32> to vector<2x256xf32>
    %74 = arith.addf %72, %73 : vector<2x256xf32>
    %75 = arith.negf %74 : vector<2x256xf32>
    %76 = math.exp %75 : vector<2x256xf32>
    %cst_20 = arith.constant 1.000000e+00 : f32
    %77 = vector.broadcast %cst_20 : f32 to vector<2x256xf32>
    %78 = arith.addf %77, %76 : vector<2x256xf32>
    %79 = arith.divf %77, %78 : vector<2x256xf32>
    %80 = vector.extract_strided_slice %79 {offsets = [0, 0], sizes = [2, 128], strides = [1, 1]} : vector<2x256xf32> to vector<2x128xf32>
    %81 = vector.extract_strided_slice %79 {offsets = [0, 128], sizes = [2, 128], strides = [1, 1]} : vector<2x256xf32> to vector<2x128xf32>
    %82 = vector.extract_strided_slice %68 {offsets = [0, 256], sizes = [2, 128], strides = [1, 1]} : vector<2x384xf32> to vector<2x128xf32>
    %83 = vector.extract_strided_slice %71 {offsets = [0, 256], sizes = [2, 128], strides = [1, 1]} : vector<2x384xf32> to vector<2x128xf32>
    %84 = arith.mulf %80, %83 : vector<2x128xf32>
    %85 = arith.addf %82, %84 : vector<2x128xf32>
    %86 = math.tanh %85 : vector<2x128xf32>
    %cst_21 = arith.constant 1.000000e+00 : f32
    %87 = vector.broadcast %cst_21 : f32 to vector<2x128xf32>
    %88 = arith.subf %87, %81 : vector<2x128xf32>
    %89 = arith.mulf %88, %86 : vector<2x128xf32>
    %90 = arith.mulf %81, %66 : vector<2x128xf32>
    %91 = arith.addf %89, %90 : vector<2x128xf32>
    %92 = vector.extract_strided_slice %11 {offsets = [0, 3, 0], sizes = [2, 1, 384], strides = [1, 1, 1]} : vector<2x8x384xf32> to vector<2x1x384xf32>
    %93 = vector.shape_cast %92 : vector<2x1x384xf32> to vector<2x384xf32>
    %94 = arith.truncf %91 : vector<2x128xf32> to vector<2x128xbf16>
    %cst_22 = arith.constant dense<0.000000e+00> : vector<2x384xf32>
    %95 = tpu.matmul %94, %12, %cst_22 {dimension_numbers = #tpu.dot_dimension_numbers<[1], [0], [0], [1], [0, 0, 1, 1], [], []>} : vector<2x128xbf16>, vector<128x384xbf16>, vector<2x384xf32> -> vector<2x384xf32>
    %96 = arith.addf %95, %15 : vector<2x384xf32>
    %97 = vector.extract_strided_slice %93 {offsets = [0, 0], sizes = [2, 256], strides = [1, 1]} : vector<2x384xf32> to vector<2x256xf32>
    %98 = vector.extract_strided_slice %96 {offsets = [0, 0], sizes = [2, 256], strides = [1, 1]} : vector<2x384xf32> to vector<2x256xf32>
    %99 = arith.addf %97, %98 : vector<2x256xf32>
    %100 = arith.negf %99 : vector<2x256xf32>
    %101 = math.exp %100 : vector<2x256xf32>
    %cst_23 = arith.constant 1.000000e+00 : f32
    %102 = vector.broadcast %cst_23 : f32 to vector<2x256xf32>
    %103 = arith.addf %102, %101 : vector<2x256xf32>
    %104 = arith.divf %102, %103 : vector<2x256xf32>
    %105 = vector.extract_strided_slice %104 {offsets = [0, 0], sizes = [2, 128], strides = [1, 1]} : vector<2x256xf32> to vector<2x128xf32>
    %106 = vector.extract_strided_slice %104 {offsets = [0, 128], sizes = [2, 128], strides = [1, 1]} : vector<2x256xf32> to vector<2x128xf32>
    %107 = vector.extract_strided_slice %93 {offsets = [0, 256], sizes = [2, 128], strides = [1, 1]} : vector<2x384xf32> to vector<2x128xf32>
    %108 = vector.extract_strided_slice %96 {offsets = [0, 256], sizes = [2, 128], strides = [1, 1]} : vector<2x384xf32> to vector<2x128xf32>
    %109 = arith.mulf %105, %108 : vector<2x128xf32>
    %110 = arith.addf %107, %109 : vector<2x128xf32>
    %111 = math.tanh %110 : vector<2x128xf32>
    %cst_24 = arith.constant 1.000000e+00 : f32
    %112 = vector.broadcast %cst_24 : f32 to vector<2x128xf32>
    %113 = arith.subf %112, %106 : vector<2x128xf32>
    %114 = arith.mulf %113, %111 : vector<2x128xf32>
    %115 = arith.mulf %106, %91 : vector<2x128xf32>
    %116 = arith.addf %114, %115 : vector<2x128xf32>
    %117 = vector.extract_strided_slice %11 {offsets = [0, 4, 0], sizes = [2, 1, 384], strides = [1, 1, 1]} : vector<2x8x384xf32> to vector<2x1x384xf32>
    %118 = vector.shape_cast %117 : vector<2x1x384xf32> to vector<2x384xf32>
    %119 = arith.truncf %116 : vector<2x128xf32> to vector<2x128xbf16>
    %cst_25 = arith.constant dense<0.000000e+00> : vector<2x384xf32>
    %120 = tpu.matmul %119, %12, %cst_25 {dimension_numbers = #tpu.dot_dimension_numbers<[1], [0], [0], [1], [0, 0, 1, 1], [], []>} : vector<2x128xbf16>, vector<128x384xbf16>, vector<2x384xf32> -> vector<2x384xf32>
    %121 = arith.addf %120, %15 : vector<2x384xf32>
    %122 = vector.extract_strided_slice %118 {offsets = [0, 0], sizes = [2, 256], strides = [1, 1]} : vector<2x384xf32> to vector<2x256xf32>
    %123 = vector.extract_strided_slice %121 {offsets = [0, 0], sizes = [2, 256], strides = [1, 1]} : vector<2x384xf32> to vector<2x256xf32>
    %124 = arith.addf %122, %123 : vector<2x256xf32>
    %125 = arith.negf %124 : vector<2x256xf32>
    %126 = math.exp %125 : vector<2x256xf32>
    %cst_26 = arith.constant 1.000000e+00 : f32
    %127 = vector.broadcast %cst_26 : f32 to vector<2x256xf32>
    %128 = arith.addf %127, %126 : vector<2x256xf32>
    %129 = arith.divf %127, %128 : vector<2x256xf32>
    %130 = vector.extract_strided_slice %129 {offsets = [0, 0], sizes = [2, 128], strides = [1, 1]} : vector<2x256xf32> to vector<2x128xf32>
    %131 = vector.extract_strided_slice %129 {offsets = [0, 128], sizes = [2, 128], strides = [1, 1]} : vector<2x256xf32> to vector<2x128xf32>
    %132 = vector.extract_strided_slice %118 {offsets = [0, 256], sizes = [2, 128], strides = [1, 1]} : vector<2x384xf32> to vector<2x128xf32>
    %133 = vector.extract_strided_slice %121 {offsets = [0, 256], sizes = [2, 128], strides = [1, 1]} : vector<2x384xf32> to vector<2x128xf32>
    %134 = arith.mulf %130, %133 : vector<2x128xf32>
    %135 = arith.addf %132, %134 : vector<2x128xf32>
    %136 = math.tanh %135 : vector<2x128xf32>
    %cst_27 = arith.constant 1.000000e+00 : f32
    %137 = vector.broadcast %cst_27 : f32 to vector<2x128xf32>
    %138 = arith.subf %137, %131 : vector<2x128xf32>
    %139 = arith.mulf %138, %136 : vector<2x128xf32>
    %140 = arith.mulf %131, %116 : vector<2x128xf32>
    %141 = arith.addf %139, %140 : vector<2x128xf32>
    %142 = vector.extract_strided_slice %11 {offsets = [0, 5, 0], sizes = [2, 1, 384], strides = [1, 1, 1]} : vector<2x8x384xf32> to vector<2x1x384xf32>
    %143 = vector.shape_cast %142 : vector<2x1x384xf32> to vector<2x384xf32>
    %144 = arith.truncf %141 : vector<2x128xf32> to vector<2x128xbf16>
    %cst_28 = arith.constant dense<0.000000e+00> : vector<2x384xf32>
    %145 = tpu.matmul %144, %12, %cst_28 {dimension_numbers = #tpu.dot_dimension_numbers<[1], [0], [0], [1], [0, 0, 1, 1], [], []>} : vector<2x128xbf16>, vector<128x384xbf16>, vector<2x384xf32> -> vector<2x384xf32>
    %146 = arith.addf %145, %15 : vector<2x384xf32>
    %147 = vector.extract_strided_slice %143 {offsets = [0, 0], sizes = [2, 256], strides = [1, 1]} : vector<2x384xf32> to vector<2x256xf32>
    %148 = vector.extract_strided_slice %146 {offsets = [0, 0], sizes = [2, 256], strides = [1, 1]} : vector<2x384xf32> to vector<2x256xf32>
    %149 = arith.addf %147, %148 : vector<2x256xf32>
    %150 = arith.negf %149 : vector<2x256xf32>
    %151 = math.exp %150 : vector<2x256xf32>
    %cst_29 = arith.constant 1.000000e+00 : f32
    %152 = vector.broadcast %cst_29 : f32 to vector<2x256xf32>
    %153 = arith.addf %152, %151 : vector<2x256xf32>
    %154 = arith.divf %152, %153 : vector<2x256xf32>
    %155 = vector.extract_strided_slice %154 {offsets = [0, 0], sizes = [2, 128], strides = [1, 1]} : vector<2x256xf32> to vector<2x128xf32>
    %156 = vector.extract_strided_slice %154 {offsets = [0, 128], sizes = [2, 128], strides = [1, 1]} : vector<2x256xf32> to vector<2x128xf32>
    %157 = vector.extract_strided_slice %143 {offsets = [0, 256], sizes = [2, 128], strides = [1, 1]} : vector<2x384xf32> to vector<2x128xf32>
    %158 = vector.extract_strided_slice %146 {offsets = [0, 256], sizes = [2, 128], strides = [1, 1]} : vector<2x384xf32> to vector<2x128xf32>
    %159 = arith.mulf %155, %158 : vector<2x128xf32>
    %160 = arith.addf %157, %159 : vector<2x128xf32>
    %161 = math.tanh %160 : vector<2x128xf32>
    %cst_30 = arith.constant 1.000000e+00 : f32
    %162 = vector.broadcast %cst_30 : f32 to vector<2x128xf32>
    %163 = arith.subf %162, %156 : vector<2x128xf32>
    %164 = arith.mulf %163, %161 : vector<2x128xf32>
    %165 = arith.mulf %156, %141 : vector<2x128xf32>
    %166 = arith.addf %164, %165 : vector<2x128xf32>
    %167 = vector.extract_strided_slice %11 {offsets = [0, 6, 0], sizes = [2, 1, 384], strides = [1, 1, 1]} : vector<2x8x384xf32> to vector<2x1x384xf32>
    %168 = vector.shape_cast %167 : vector<2x1x384xf32> to vector<2x384xf32>
    %169 = arith.truncf %166 : vector<2x128xf32> to vector<2x128xbf16>
    %cst_31 = arith.constant dense<0.000000e+00> : vector<2x384xf32>
    %170 = tpu.matmul %169, %12, %cst_31 {dimension_numbers = #tpu.dot_dimension_numbers<[1], [0], [0], [1], [0, 0, 1, 1], [], []>} : vector<2x128xbf16>, vector<128x384xbf16>, vector<2x384xf32> -> vector<2x384xf32>
    %171 = arith.addf %170, %15 : vector<2x384xf32>
    %172 = vector.extract_strided_slice %168 {offsets = [0, 0], sizes = [2, 256], strides = [1, 1]} : vector<2x384xf32> to vector<2x256xf32>
    %173 = vector.extract_strided_slice %171 {offsets = [0, 0], sizes = [2, 256], strides = [1, 1]} : vector<2x384xf32> to vector<2x256xf32>
    %174 = arith.addf %172, %173 : vector<2x256xf32>
    %175 = arith.negf %174 : vector<2x256xf32>
    %176 = math.exp %175 : vector<2x256xf32>
    %cst_32 = arith.constant 1.000000e+00 : f32
    %177 = vector.broadcast %cst_32 : f32 to vector<2x256xf32>
    %178 = arith.addf %177, %176 : vector<2x256xf32>
    %179 = arith.divf %177, %178 : vector<2x256xf32>
    %180 = vector.extract_strided_slice %179 {offsets = [0, 0], sizes = [2, 128], strides = [1, 1]} : vector<2x256xf32> to vector<2x128xf32>
    %181 = vector.extract_strided_slice %179 {offsets = [0, 128], sizes = [2, 128], strides = [1, 1]} : vector<2x256xf32> to vector<2x128xf32>
    %182 = vector.extract_strided_slice %168 {offsets = [0, 256], sizes = [2, 128], strides = [1, 1]} : vector<2x384xf32> to vector<2x128xf32>
    %183 = vector.extract_strided_slice %171 {offsets = [0, 256], sizes = [2, 128], strides = [1, 1]} : vector<2x384xf32> to vector<2x128xf32>
    %184 = arith.mulf %180, %183 : vector<2x128xf32>
    %185 = arith.addf %182, %184 : vector<2x128xf32>
    %186 = math.tanh %185 : vector<2x128xf32>
    %cst_33 = arith.constant 1.000000e+00 : f32
    %187 = vector.broadcast %cst_33 : f32 to vector<2x128xf32>
    %188 = arith.subf %187, %181 : vector<2x128xf32>
    %189 = arith.mulf %188, %186 : vector<2x128xf32>
    %190 = arith.mulf %181, %166 : vector<2x128xf32>
    %191 = arith.addf %189, %190 : vector<2x128xf32>
    %192 = vector.extract_strided_slice %11 {offsets = [0, 7, 0], sizes = [2, 1, 384], strides = [1, 1, 1]} : vector<2x8x384xf32> to vector<2x1x384xf32>
    %193 = vector.shape_cast %192 : vector<2x1x384xf32> to vector<2x384xf32>
    %194 = arith.truncf %191 : vector<2x128xf32> to vector<2x128xbf16>
    %cst_34 = arith.constant dense<0.000000e+00> : vector<2x384xf32>
    %195 = tpu.matmul %194, %12, %cst_34 {dimension_numbers = #tpu.dot_dimension_numbers<[1], [0], [0], [1], [0, 0, 1, 1], [], []>} : vector<2x128xbf16>, vector<128x384xbf16>, vector<2x384xf32> -> vector<2x384xf32>
    %196 = arith.addf %195, %15 : vector<2x384xf32>
    %197 = vector.extract_strided_slice %193 {offsets = [0, 0], sizes = [2, 256], strides = [1, 1]} : vector<2x384xf32> to vector<2x256xf32>
    %198 = vector.extract_strided_slice %196 {offsets = [0, 0], sizes = [2, 256], strides = [1, 1]} : vector<2x384xf32> to vector<2x256xf32>
    %199 = arith.addf %197, %198 : vector<2x256xf32>
    %200 = arith.negf %199 : vector<2x256xf32>
    %201 = math.exp %200 : vector<2x256xf32>
    %cst_35 = arith.constant 1.000000e+00 : f32
    %202 = vector.broadcast %cst_35 : f32 to vector<2x256xf32>
    %203 = arith.addf %202, %201 : vector<2x256xf32>
    %204 = arith.divf %202, %203 : vector<2x256xf32>
    %205 = vector.extract_strided_slice %204 {offsets = [0, 0], sizes = [2, 128], strides = [1, 1]} : vector<2x256xf32> to vector<2x128xf32>
    %206 = vector.extract_strided_slice %204 {offsets = [0, 128], sizes = [2, 128], strides = [1, 1]} : vector<2x256xf32> to vector<2x128xf32>
    %207 = vector.extract_strided_slice %193 {offsets = [0, 256], sizes = [2, 128], strides = [1, 1]} : vector<2x384xf32> to vector<2x128xf32>
    %208 = vector.extract_strided_slice %196 {offsets = [0, 256], sizes = [2, 128], strides = [1, 1]} : vector<2x384xf32> to vector<2x128xf32>
    %209 = arith.mulf %205, %208 : vector<2x128xf32>
    %210 = arith.addf %207, %209 : vector<2x128xf32>
    %211 = math.tanh %210 : vector<2x128xf32>
    %cst_36 = arith.constant 1.000000e+00 : f32
    %212 = vector.broadcast %cst_36 : f32 to vector<2x128xf32>
    %213 = arith.subf %212, %206 : vector<2x128xf32>
    %214 = arith.mulf %213, %211 : vector<2x128xf32>
    %215 = arith.mulf %206, %191 : vector<2x128xf32>
    %216 = arith.addf %214, %215 : vector<2x128xf32>
    %c0_37 = arith.constant 0 : index
    %c0_38 = arith.constant 0 : index
    %217 = vector.load %arg9[%c0_37, %c0_38] : memref<2x128xf32, #tpu.memory_space<vmem>>, vector<2x128xf32>
    tpu.vector_store %arg9[%c0_37, %c0_38], %216 {strides = array<i32>} : memref<2x128xf32, #tpu.memory_space<vmem>>, vector<2x128xf32>,
    %c0_i32_39 = arith.constant 0 : i32
    %218 = arith.cmpi eq, %arg0, %c0_i32_39 : i32
    %219 = arith.extui %218 : i1 to i32
    %c0_i32_40 = arith.constant 0 : i32
    %220 = arith.cmpi ne, %219, %c0_i32_40 : i32
    scf.if %220 {
      %c0_41 = arith.constant 0 : index
      %c0_42 = arith.constant 0 : index
      %221 = vector.load %arg6[%c0_41, %c0_42] : memref<1x128xf32, #tpu.memory_space<vmem>>, vector<1x128xf32>
      %222 = vector.broadcast %221 : vector<1x128xf32> to vector<2x128xf32>
      %223 = arith.mulf %216, %222 : vector<2x128xf32>
      %cst_43 = arith.constant dense<0.000000e+00> : vector<2xf32>
      %224 = vector.multi_reduction <add>, %223, %cst_43 [1] : vector<2x128xf32> to vector<2xf32>
      %225 = vector.shape_cast %224 : vector<2xf32> to vector<2x1xf32>
      %c0_44 = arith.constant 0 : index
      %c0_45 = arith.constant 0 : index
      %226 = memref.load %arg7[%c0_44, %c0_45] : memref<1x1xf32, #tpu.memory_space<smem>>
      %227 = vector.broadcast %226 : f32 to vector<2x1xf32>
      %228 = arith.addf %225, %227 : vector<2x1xf32>
      %229 = arith.negf %228 : vector<2x1xf32>
      %230 = math.exp %229 : vector<2x1xf32>
      %cst_46 = arith.constant 1.000000e+00 : f32
      %231 = vector.broadcast %cst_46 : f32 to vector<2x1xf32>
      %232 = arith.addf %231, %230 : vector<2x1xf32>
      %233 = arith.divf %231, %232 : vector<2x1xf32>
      %c0_47 = arith.constant 0 : index
      %c0_48 = arith.constant 0 : index
      %234 = vector.load %arg8[%c0_47, %c0_48] : memref<2x1xf32, #tpu.memory_space<vmem>>, vector<2x1xf32>
      tpu.vector_store %arg8[%c0_47, %c0_48], %233 {strides = array<i32>} : memref<2x1xf32, #tpu.memory_space<vmem>>, vector<2x1xf32>,
    } else {
    }
    return
  }
  func.func @transform_0(%arg0: i32) -> (i32, i32, i32) {
    %c0_i32 = arith.constant 0 : i32
    %c0_i32_0 = arith.constant 0 : i32
    %c0_i32_1 = arith.constant 0 : i32
    return %c0_i32, %arg0, %c0_i32_0 : i32, i32, i32
  }
  func.func @transform_1(%arg0: i32) -> (i32, i32) {
    %c0_i32 = arith.constant 0 : i32
    %c0_i32_0 = arith.constant 0 : i32
    %c0_i32_1 = arith.constant 0 : i32
    return %c0_i32, %c0_i32_0 : i32, i32
  }
  func.func @transform_2(%arg0: i32) -> (i32, i32) {
    %c0_i32 = arith.constant 0 : i32
    %c0_i32_0 = arith.constant 0 : i32
    %c0_i32_1 = arith.constant 0 : i32
    return %c0_i32, %c0_i32_0 : i32, i32
  }
  func.func @transform_3(%arg0: i32) -> (i32, i32) {
    %c0_i32 = arith.constant 0 : i32
    %c0_i32_0 = arith.constant 0 : i32
    %c0_i32_1 = arith.constant 0 : i32
    return %c0_i32, %c0_i32_0 : i32, i32
  }
  func.func @transform_4(%arg0: i32) -> (i32, i32) {
    %c0_i32 = arith.constant 0 : i32
    %c0_i32_0 = arith.constant 0 : i32
    %c0_i32_1 = arith.constant 0 : i32
    return %c0_i32, %c0_i32_0 : i32, i32
  }
  func.func @transform_5(%arg0: i32) -> (i32, i32) {
    %c0_i32 = arith.constant 0 : i32
    %c0_i32_0 = arith.constant 0 : i32
    %c0_i32_1 = arith.constant 0 : i32
    return %c0_i32, %c0_i32_0 : i32, i32
  }
  func.func @transform_6(%arg0: i32) -> (i32, i32) {
    %c0_i32 = arith.constant 0 : i32
    %c0_i32_0 = arith.constant 0 : i32
    %c0_i32_1 = arith.constant 0 : i32
    return %c0_i32, %c0_i32_0 : i32, i32
  }
  func.func @transform_7(%arg0: i32) -> (i32, i32) {
    %c0_i32 = arith.constant 0 : i32
    %c0_i32_0 = arith.constant 0 : i32
    %c0_i32_1 = arith.constant 0 : i32
    return %c0_i32, %c0_i32_0 : i32, i32
  }
}

</mosaic_0001>

<bundles_post_ra>
// kernel: rnn_forward.1
= control target key start
LH: loop header
LB: loop body
LE: loop exit
PB: predicated region body
PF: predicated region fallthrough
CT: control target
= control target key end

     0   :  { %13 = vsyncpa [#allocation5], 0  ;;  %s3126_s0 = inlined_call_operand.hbm [shape: f32[2,8,100], index: 0, kind: input, shape index: {}]   ;;  %s3127_s1 = inlined_call_operand.hbm [shape: bf16[100,384], index: 1, kind: input, shape index: {}]   ;;  %s3128_s2 = inlined_call_operand.hbm [shape: bf16[128,384], index: 2, kind: input, shape index: {}]   ;;  %s3129_s3 = inlined_call_operand.vmem [shape: f32[1,384], index: 3, kind: input, shape index: {}]   ;;  %s3130_s4 = inlined_call_operand.vmem [shape: f32[1,384], index: 4, kind: input, shape index: {}]   ;;  %s3131_s5 = inlined_call_operand.vmem [shape: f32[1,128], index: 5, kind: input, shape index: {}]   ;;  %s3132_s6 = inlined_call_operand.<no memory space> [shape: f32[1,1], index: 6, kind: input, shape index: {}]   ;;  %s3133_s7 = inlined_call_operand.vmem [shape: f32[2,1], index: 7, kind: output, shape index: {}]  }
   0x1   :  { %14 = vsyncpa [#allocation7], 0  ;;  %s2451_s24 = smov [#allocation6]   ;;  %s2381_s28 = scalar_lea.hbm %s3127_s1, 2496 }
   0x2   :  { %s32_s25 = sshll.u32 %s2451_s24, 4  ;;  %p2382_p0 = scmp.ne.s32.totalorder %s3127_s1, %s2381_s28  ;;  %s33_s25 = int_to_ptr.vmem [resolvable:$true] %s32_s25 }
   0x3   :  { %p2385_p1 = scmp.lt.u32.totalorder %s2381_s28, %s3127_s1 }
   0x5   :  { %p2387_p2 = pnand %p2385_p1, %p2382_p0 }
   0x7   :  { %2390 = shalt.err (!%p2387_p2)
}
   0x8   :  { %s2391_s10 = scalar_lea.vmem %s33_s25, 2496  ;;  %p2396_p4 = scmp.lt.s32.totalorder %s33_s25, %s33_s25 }
   0x9   :  { %p2392_p3 = scmp.ne.s32.totalorder %s33_s25, %s2391_s10  ;;  %p2397_p5 = scmp.lt.s32.totalorder %s2391_s10, %s2391_s10 }
   0xb   :  { %p2398_p6 = por %p2397_p5, %p2396_p4 }
   0xd   :  { %p2399_p7 = pnand %p2398_p6, %p2392_p3 }
   0xf   :  { %2402 = shalt.err (!%p2399_p7)
}
  0x10   :  { %s2452_s11 = smov 192   ;;  %s2453_s12 = smov 12  }
  0x11   :  { %38 = dma.hbm_to_vmem [thread:$0]  %s3127_s1, 2496, %s33_s25, [#allocation7], %s2452_s11, %s2452_s11, %s2453_s12  }
  0x12   :  { %s2454_s15 = smov [#allocation4]   ;;  %s2403_s19 = scalar_lea.hbm %s3126_s0, 256 }
  0x13   :  { %s20_s16 = sshll.u32 %s2454_s15, 4  ;;  %p2404_p8 = scmp.ne.s32.totalorder %s3126_s0, %s2403_s19  ;;  %s21_s16 = int_to_ptr.vmem [resolvable:$true] %s20_s16 }
  0x14   :  { %p2407_p9 = scmp.lt.u32.totalorder %s2403_s19, %s3126_s0 }
  0x16   :  { %p2409_p10 = pnand %p2407_p9, %p2404_p8 }
  0x18   :  { %2412 = shalt.err (!%p2409_p10)
}
  0x19   :  { %s2413_s24 = scalar_lea.vmem %s21_s16, 256  ;;  %p2418_p12 = scmp.lt.s32.totalorder %s21_s16, %s21_s16 }
  0x1a   :  { %p2414_p11 = scmp.ne.s32.totalorder %s21_s16, %s2413_s24  ;;  %p2419_p13 = scmp.lt.s32.totalorder %s2413_s24, %s2413_s24 }
  0x1c   :  { %p2420_p0 = por %p2419_p13, %p2418_p12 }
  0x1e   :  { %p2421_p1 = pnand %p2420_p0, %p2414_p11 }
  0x20   :  { %2424 = shalt.err (!%p2421_p1)
}
  0x21   :  { %s2455_s1 = smov 128   ;;  %s2456_s25 = smov 8  }
  0x22   :  { %26 = dma.hbm_to_vmem [thread:$0]  %s3126_s0, 256, %s21_s16, [#allocation5], %s2455_s1, %s2455_s1, %s2456_s25  }
  0x23   :  { %s2457_s28 = smov [#allocation8]   ;;  %s2425_s9 = scalar_lea.hbm %s3128_s2, 3072 }
  0x24   :  { %s44_s29 = sshll.u32 %s2457_s28, 4  ;;  %p2426_p2 = scmp.ne.s32.totalorder %s3128_s2, %s2425_s9  ;;  %s45_s29 = int_to_ptr.vmem [resolvable:$true] %s44_s29 }
  0x25   :  { %p2429_p3 = scmp.lt.u32.totalorder %s2425_s9, %s3128_s2 }
  0x27   :  { %p2431_p4 = pnand %p2429_p3, %p2426_p2 }
  0x29   :  { %2434 = shalt.err (!%p2431_p4)
}
  0x2a   :  { %s2435_s17 = scalar_lea.vmem %s45_s29, 3072  ;;  %p2440_p6 = scmp.lt.s32.totalorder %s45_s29, %s45_s29 }
  0x2b   :  { %p2436_p5 = scmp.ne.s32.totalorder %s45_s29, %s2435_s17  ;;  %p2441_p7 = scmp.lt.s32.totalorder %s2435_s17, %s2435_s17 }
  0x2d   :  { %p2442_p8 = por %p2441_p7, %p2440_p6 }
  0x2f   :  { %p2443_p9 = pnand %p2442_p8, %p2436_p5 }
  0x31   :  { %2446 = shalt.err (!%p2443_p9)
}
  0x32   :  { %50 = dma.hbm_to_vmem [thread:$0]  %s3128_s2, 3072, %s45_s29, [#allocation7], %s2452_s11, %s2452_s11, %s2453_s12  }
  0x33   :  { %2447 = dma.done.wait [#allocation5], 256  }
  0x34   :  { %2448 = vsyncadd [#allocation5], 4294967040 }
  0x35   :  { %2449 = dma.done.wait [#allocation7], 5568  }
  0x36   :  { %2450 = vsyncadd [#allocation7], 4294961728  ;;  %v2458_v0 = vmov 0.0   ;;  %v2459_v1 = vmov 0   ;;  %vm2460_vm0 = vmmov 0   ;;  %vm228_vm1 = vcmask 1041408  }
  0x37   :  { %1942 = vmatprep.subr.bf16.mxu1 %v2458_v0  ;;  %73 = vst [vmem:[#allocation2] sm:$0x3] %v2458_v0  ;;  %270 = vmatprep.mubr.bf16.mxu0 %v2459_v1  ;;  %v2130_v2 = vld [vmem:[#allocation6 + $0x4] ss:$12 sps:$4 sm:$0xff]   ;;  %v2132_v3 = vld [vmem:[#allocation6] ss:$12 sps:$4 sm:$0xff]   ;;  %v105_v63 = vlaneseq }
  0x38   :  { %1956 = vmatprep.mubr.msk.bf16.mxu1 %vm2460_vm0, %v2458_v0  ;;  %238 = vmatprep.subr.bf16.mxu0 %v2130_v2  ;;  %v2133_v4 = vld [vmem:[#allocation6 + $0x1c] ss:$12 sps:$4 sm:$0xff]   ;;  %v2135_v5 = vld [vmem:[#allocation6 + $0x18] ss:$12 sps:$4 sm:$0xff]   ;;  %v2136_v6 = vld [vmem:[#allocation6 + $0x34] ss:$12 sps:$4 sm:$0xff]  }
  0x39   :  { %239 = vmatpush1.bf16.msra.mxu0 %v2132_v3  ;;  %v2138_v7 = vld [vmem:[#allocation6 + $0x30] ss:$12 sps:$4 sm:$0xff]   ;;  %v2139_v8 = vld [vmem:[#allocation6 + $0x4c] ss:$12 sps:$4 sm:$0xff]   ;;  %v2150_v9 = vld [vmem:[#allocation6 + $0x8] ss:$12 sps:$4 sm:$0xff]  }
  0x3a   :  { %240 = vmatprep.subr.bf16.mxu0 %v2133_v4  ;;  %v2141_v10 = vld [vmem:[#allocation6 + $0x48] ss:$12 sps:$4 sm:$0xff]   ;;  %v2142_v11 = vld [vmem:[#allocation6 + $0x64] ss:$12 sps:$4 sm:$0xff]   ;;  %1943 = vmatpush3.bf16.msra.mxu1 %v2150_v9  ;;  %v2154_v12 = vld [vmem:[#allocation6 + $0x20] ss:$12 sps:$4 sm:$0xff]  }
  0x3b   :  { %1944 = vmatprep.subr.bf16.mxu1 %v2458_v0  ;;  %v2144_v13 = vld [vmem:[#allocation6 + $0x60] ss:$12 sps:$4 sm:$0xff]   ;;  %v2158_v14 = vld [vmem:[#allocation6 + $0x38] ss:$12 sps:$4 sm:$0xff]   ;;  %v2145_v15 = vld [vmem:[#allocation6 + $0x7c] ss:$12 sps:$4 sm:$0xff]  }
  0x3c   :  { %v101_v16 = vld [vmem:[#allocation6 + $0x90] sm:$0x33]  ;;  %v2147_v17 = vld [vmem:[#allocation6 + $0x78] ss:$12 sps:$4 sm:$0xff]   ;;  %v2553_v25 = vld [vmem:[#allocation8 + $0x4] ss:$12 sps:$4 sm:$0xff]  }
  0x3d   :  { %241 = vmatpush1.bf16.msra.mxu0 %v2135_v5  ;;  %v2162_v18 = vld [vmem:[#allocation6 + $0x50] ss:$12 sps:$4 sm:$0xff]   ;;  %v1798_v19 = vcombine.high %v101_v16, %v101_v16  ;;  %v1797_v20 = vcombine.low %v101_v16, %v101_v16  ;;  %v2166_v23 = vld [vmem:[#allocation6 + $0x68] ss:$12 sps:$4 sm:$0xff]   ;;  %vm224_vm2 = vcmask 818176   ;;  %v106_v2 = vshrl.u32 %v105_v63, 7 }
  0x3e   :  { %242 = vmatprep.subr.bf16.mxu0 %v2136_v6  ;;  %1945 = vmatpush3.bf16.msra.mxu1 %v2154_v12  ;;  %v74_v21 = vld [vmem:[#allocation4] sm:$0xff]  ;;  %v75_v22 = vld [vmem:[#allocation4 + $0x8] sm:$0xff]  ;;  %v2170_v29 = vld [vmem:[#allocation6 + $0x80] ss:$12 sps:$4 sm:$0xff]   ;;  %vm647_vm3 = vcmask 1041409   ;;  %vm1745_vm4 = vcmask 1047559  }
  0x3f   :  { %1946 = vmatprep.subr.bf16.mxu1 %v2458_v0  ;;  %v230_v24 = vsel %vm228_vm1, %v1797_v20, 0  ;;  %v76_v26 = vpack.c.bf16 %v75_v22, %v74_v21  ;;  %v2556_v27 = vld [vmem:[#allocation8] ss:$12 sps:$4 sm:$0xff]   ;;  %v2558_v28 = vld [vmem:[#allocation8 + $0x1c] ss:$12 sps:$4 sm:$0xff]   ;;  %v107_v3 = vsub.s32 0, %v106_v2 }
  0x40   :  { %v2174_v30 = vld [vmem:[#allocation6 + $0x98] ss:$0 sps:$4 sm:$0x33]   ;;  %v2563_v31 = vld [vmem:[#allocation8 + $0x18] ss:$12 sps:$4 sm:$0xff]   ;;  %v111_v6 = vsub.s32 1, %v106_v2 }
  0x41   :  { %243 = vmatpush1.bf16.msra.mxu0 %v2138_v7  ;;  %v2566_v32 = vld [vmem:[#allocation8 + $0x34] ss:$12 sps:$4 sm:$0xff]   ;;  %v236_v33 = vsel %vm228_vm1, %v2174_v30, 0  ;;  %v2573_v34 = vld [vmem:[#allocation8 + $0x30] ss:$12 sps:$4 sm:$0xff]   ;;  %vm1749_vm5 = vcmask 1040384  }
  0x42   :  { %244 = vmatprep.subr.bf16.mxu0 %v2139_v8  ;;  %1947 = vmatpush3.bf16.msra.mxu1 %v2158_v14  ;;  %v2575_v35 = vld [vmem:[#allocation8 + $0x8] ss:$12 sps:$4 sm:$0xff]   ;;  %v2578_v36 = vld [vmem:[#allocation8 + $0x4c] ss:$12 sps:$4 sm:$0xff]   ;;  %v2589_v39 = vld [vmem:[#allocation8 + $0x64] ss:$12 sps:$4 sm:$0xff]  }
  0x43   :  { %1948 = vmatprep.subr.bf16.mxu1 %v2458_v0  ;;  %v2583_v37 = vld [vmem:[#allocation8 + $0x48] ss:$12 sps:$4 sm:$0xff]   ;;  %v2586_v38 = vld [vmem:[#allocation8 + $0x20] ss:$12 sps:$4 sm:$0xff]   ;;  %v2598_v41 = vld [vmem:[#allocation8 + $0x38] ss:$12 sps:$4 sm:$0xff]  }
  0x44   :  { %v2595_v40 = vld [vmem:[#allocation8 + $0x60] ss:$12 sps:$4 sm:$0xff]   ;;  %v2601_v42 = vld [vmem:[#allocation8 + $0x7c] ss:$12 sps:$4 sm:$0xff]   ;;  %v2605_v43 = vld [vmem:[#allocation8 + $0x78] ss:$12 sps:$4 sm:$0xff]  }
  0x45   :  { %245 = vmatpush1.bf16.msra.mxu0 %v2141_v10  ;;  %v2608_v44 = vld [vmem:[#allocation8 + $0x50] ss:$12 sps:$4 sm:$0xff]   ;;  %v2611_v45 = vld [vmem:[#allocation8 + $0x94] ss:$12 sps:$4 sm:$0xff]   ;;  %v2621_v48 = vld [vmem:[#allocation8 + $0xac] ss:$12 sps:$4 sm:$0xff]  }
  0x46   :  { %246 = vmatprep.subr.bf16.mxu0 %v2142_v11  ;;  %1949 = vmatpush3.bf16.msra.mxu1 %v2162_v18  ;;  %v2615_v46 = vld [vmem:[#allocation8 + $0x90] ss:$12 sps:$4 sm:$0xff]   ;;  %v2618_v47 = vld [vmem:[#allocation8 + $0x68] ss:$12 sps:$4 sm:$0xff]   ;;  %v2630_v51 = vld [vmem:[#allocation8 + $0x80] ss:$12 sps:$4 sm:$0xff]  }
  0x47   :  { %1950 = vmatprep.subr.bf16.mxu1 %v2458_v0  ;;  %v2625_v49 = vld [vmem:[#allocation8 + $0xa8] ss:$12 sps:$4 sm:$0xff]   ;;  %v2627_v50 = vld [vmem:[#allocation2] sm:$0x3]  ;;  %v2638_v53 = vld [vmem:[#allocation8 + $0x98] ss:$12 sps:$4 sm:$0xff]  }
  0x48   :  { %v372_v52 = vpack.c.bf16 %v2627_v50, %v2627_v50  ;;  %v2643_v54 = vld [vmem:[#allocation8 + $0xb0] ss:$12 sps:$4 sm:$0xff]   ;;  %vm1769_vm6 = vcmask 7175   ;;  %vm1771_vm7 = vcmask 0  }
  0x49   :  { %247 = vmatpush1.bf16.msra.mxu0 %v2144_v13  ;;  %v103_v4 = vld [vmem:[%s3129_s3] sm:$0x7] }
  0x4a   :  { %248 = vmatprep.subr.bf16.mxu0 %v2145_v15  ;;  %1951 = vmatpush3.bf16.msra.mxu1 %v2166_v23  ;;  %v354_v5 = vld [vmem:[%s3130_s4] sm:$0x7]  ;;  %v108_v7 = vrot.slane %v103_v4, %v107_v3  ;;  %v112_v10 = vrot.slane %v103_v4, %v111_v6 }
  0x4b   :  { %1952 = vmatprep.subr.bf16.mxu1 %v2458_v0  ;;  %v2689_v8 = vrot.slane %v354_v5, %v107_v3  ;;  %v2691_v9 = vrot.slane %v354_v5, %v111_v6 }
  0x4d   :  { %249 = vmatpush1.bf16.msra.mxu0 %v2147_v17 }
  0x4e   :  { %1800 = vmatprep.subr.msk.bf16.mxu0 %vm228_vm1, %v1798_v19  ;;  %1953 = vmatpush3.bf16.msra.mxu1 %v2170_v29 }
  0x4f   :  { %1954 = vmatprep.subr.bf16.mxu1 %v2458_v0 }
  0x51   :  { %251 = vmatpush1.bf16.msra.mxu0 %v230_v24 }
  0x52   :  { %501 = vmatprep.subr.bf16.mxu0 %v2553_v25  ;;  %1955 = vmatpush3.bf16.msra.mxu1 %v236_v33 }
  0x53   :  { %1960 = vmatprep.subr.bf16.mxu1 %v2458_v0 }
  0x54   :  { %1801 = vmatmul.mubr.msk.bf16.vlgmr.msra.gmra.mrb[0].mxu0 %vm224_vm2, %v76_v26 }
  0x55   :  { %502 = vmatpush1.bf16.msra.mxu0 %v2556_v27  ;;  %533 = vmatprep.mubr.bf16.mxu0 %v2459_v1 }
  0x56   :  { %503 = vmatprep.subr.bf16.mxu0 %v2558_v28  ;;  %1957 = vmatmul.mubr.msk.bf16.vlgmr.msra.gmra.mrb[0].mxu1 %vm224_vm2, %v76_v26 }
  0x57   :  { %1961 = vmatpush3.bf16.msra.mxu1 %v2575_v35  ;;  %1976 = vmatprep.mubr.msk.bf16.mxu1 %vm2460_vm0, %v2458_v0 }
  0x58   :  { %1962 = vmatprep.subr.bf16.mxu1 %v2458_v0 }
  0x59   :  { %504 = vmatpush1.bf16.msra.mxu0 %v2563_v31 }
  0x5a   :  { %505 = vmatprep.subr.bf16.mxu0 %v2566_v32 }
  0x5b   :  { %1963 = vmatpush3.bf16.msra.mxu1 %v2586_v38 }
  0x5c   :  { %1964 = vmatprep.subr.bf16.mxu1 %v2458_v0 }
  0x5d   :  { %506 = vmatpush1.bf16.msra.mxu0 %v2573_v34 }
  0x5e   :  { %507 = vmatprep.subr.bf16.mxu0 %v2578_v36 }
  0x5f   :  { %1965 = vmatpush3.bf16.msra.mxu1 %v2598_v41 }
  0x60   :  { %1966 = vmatprep.subr.bf16.mxu1 %v2458_v0 }
  0x61   :  { %508 = vmatpush1.bf16.msra.mxu0 %v2583_v37 }
  0x62   :  { %509 = vmatprep.subr.bf16.mxu0 %v2589_v39 }
  0x63   :  { %1967 = vmatpush3.bf16.msra.mxu1 %v2608_v44 }
  0x64   :  { %1968 = vmatprep.subr.bf16.mxu1 %v2458_v0 }
  0x65   :  { %510 = vmatpush1.bf16.msra.mxu0 %v2595_v40 }
  0x66   :  { %511 = vmatprep.subr.bf16.mxu0 %v2601_v42 }
  0x67   :  { %1969 = vmatpush3.bf16.msra.mxu1 %v2618_v47 }
  0x68   :  { %1970 = vmatprep.subr.bf16.mxu1 %v2458_v0 }
  0x69   :  { %512 = vmatpush1.bf16.msra.mxu0 %v2605_v43 }
  0x6a   :  { %513 = vmatprep.subr.bf16.mxu0 %v2611_v45 }
  0x6b   :  { %1971 = vmatpush3.bf16.msra.mxu1 %v2630_v51 }
  0x6c   :  { %1972 = vmatprep.subr.bf16.mxu1 %v2458_v0 }
  0x6d   :  { %514 = vmatpush1.bf16.msra.mxu0 %v2615_v46 }
  0x6e   :  { %515 = vmatprep.subr.bf16.mxu0 %v2621_v48 }
  0x6f   :  { %1973 = vmatpush3.bf16.msra.mxu1 %v2638_v53 }
  0x70   :  { %1974 = vmatprep.subr.bf16.mxu1 %v2458_v0 }
  0x71   :  { %516 = vmatpush1.bf16.msra.mxu0 %v2625_v49 }
  0x72   :  { %651 = vmatprep.subr.bf16.mxu0 %v2553_v25 }
  0x73   :  { %1975 = vmatpush3.bf16.msra.mxu1 %v2643_v54 }
  0x74   :  { %534 = vmatmul.mubr.bf16.vlgmr.msra.gmra.mrb[4].mxu0 %v372_v52  ;;  %1980 = vmatprep.subr.bf16.mxu1 %v2458_v0 }
  0x75   :  { %652 = vmatpush1.bf16.msra.mxu0 %v2556_v27  ;;  %683 = vmatprep.mubr.bf16.mxu0 %v2459_v1 }
  0x76   :  { %653 = vmatprep.subr.bf16.mxu0 %v2558_v28  ;;  %1977 = vmatmul.mubr.bf16.vlgmr.msra.gmra.mrb[4].mxu1 %v372_v52 }
  0x77   :  { %1981 = vmatpush3.bf16.msra.mxu1 %v2575_v35  ;;  %1996 = vmatprep.mubr.msk.bf16.mxu1 %vm2460_vm0, %v2458_v0 }
  0x78   :  { %1982 = vmatprep.subr.bf16.mxu1 %v2458_v0 }
  0x79   :  { %654 = vmatpush1.bf16.msra.mxu0 %v2563_v31 }
  0x7a   :  { %655 = vmatprep.subr.bf16.mxu0 %v2566_v32 }
  0x7b   :  { %1983 = vmatpush3.bf16.msra.mxu1 %v2586_v38 }
  0x7c   :  { %1984 = vmatprep.subr.bf16.mxu1 %v2458_v0 }
  0x7d   :  { %656 = vmatpush1.bf16.msra.mxu0 %v2573_v34 }
  0x7e   :  { %657 = vmatprep.subr.bf16.mxu0 %v2578_v36 }
  0x7f   :  { %1985 = vmatpush3.bf16.msra.mxu1 %v2598_v41 }
  0x80   :  { %1986 = vmatprep.subr.bf16.mxu1 %v2458_v0 }
  0x81   :  { %658 = vmatpush1.bf16.msra.mxu0 %v2583_v37 }
  0x82   :  { %659 = vmatprep.subr.bf16.mxu0 %v2589_v39 }
  0x83   :  { %1987 = vmatpush3.bf16.msra.mxu1 %v2608_v44 }
  0x84   :  { %1988 = vmatprep.subr.bf16.mxu1 %v2458_v0 }
  0x85   :  { %660 = vmatpush1.bf16.msra.mxu0 %v2595_v40 }
  0x86   :  { %661 = vmatprep.subr.bf16.mxu0 %v2601_v42 }
  0x87   :  { %1989 = vmatpush3.bf16.msra.mxu1 %v2618_v47 }
  0x88   :  { %1990 = vmatprep.subr.bf16.mxu1 %v2458_v0 }
  0x89   :  { %662 = vmatpush1.bf16.msra.mxu0 %v2605_v43 }
  0x8a   :  { %663 = vmatprep.subr.bf16.mxu0 %v2611_v45 }
  0x8b   :  { %1991 = vmatpush3.bf16.msra.mxu1 %v2630_v51 }
  0x8c   :  { %1992 = vmatprep.subr.bf16.mxu1 %v2458_v0 }
  0x8d   :  { %664 = vmatpush1.bf16.msra.mxu0 %v2615_v46 }
  0x8e   :  { %665 = vmatprep.subr.bf16.mxu0 %v2621_v48 }
  0x8f   :  { %1993 = vmatpush3.bf16.msra.mxu1 %v2638_v53 }
  0x90   :  { %1994 = vmatprep.subr.bf16.mxu1 %v2458_v0 }
  0x91   :  { %666 = vmatpush1.bf16.msra.mxu0 %v2625_v49 }
  0x92   :  { %802 = vmatprep.subr.bf16.mxu0 %v2553_v25 }
  0x93   :  { %1995 = vmatpush3.bf16.msra.mxu1 %v2643_v54 }
  0x94   :  { %2000 = vmatprep.subr.bf16.mxu1 %v2458_v0 }
 0x127   :  { %v272_v55 = vpop.f32.mrb[0].mxu0 }
 0x128   :  { %v274_v56 = vpop.f32.mrb[1].mxu0  ;;  %v2693_v12 = vadd.f32 %v272_v55, %v108_v7 }
 0x129   :  { %v276_v57 = vpop.f32.mrb[2].mxu0  ;;  %v315_v59 = vpop.f32.mrb[0].mxu1  ;;  %v2700_v21 = vadd.f32 %v274_v56, %v112_v10 }
 0x12a   :  { %v278_v58 = vpop.f32.mrb[3].mxu0  ;;  %v1958_v60 = vpop.f32.mrb[1].mxu1  ;;  %v2697_v17 = vadd.f32 %v276_v57, %v108_v7 }
 0x12b   :  { %v318_v61 = vpop.f32.mrb[2].mxu1  ;;  %v2703_v26 = vadd.f32 %v278_v58, %v112_v10  ;;  %v115_v58 = vsub.s32 2, %v106_v2 }
 0x12c   :  { %v1959_v62 = vpop.f32.mrb[3].mxu1 }
 0x12d   :  { %v2707_v10 = vrot.slane %v354_v5, %v115_v58 }
 0x147   :  { %v535_v11 = vpop.f32.mrb[4].mxu0 }
 0x148   :  { %v536_v13 = vadd.f32 %v535_v11, %v2689_v8  ;;  %v537_v14 = vpop.f32.mrb[5].mxu0 }
 0x149   :  { %v538_v15 = vadd.f32 %v537_v14, %v2691_v9  ;;  %v539_v16 = vpop.f32.mrb[6].mxu0  ;;  %v576_v52 = vpop.f32.mrb[4].mxu1 }
 0x14a   :  { %v584_v18 = vrot.slane %v536_v13, 1  ;;  %v590_v19 = vadd.f32 %v536_v13, %v2693_v12  ;;  %v540_v20 = vpop.f32.mrb[7].mxu0  ;;  %v1978_v55 = vpop.f32.mrb[5].mxu1  ;;  %v577_v13 = vadd.f32 %v576_v52, %v2707_v10 }
 0x14b   :  { %v585_v22 = vrot.slane %v538_v15, 1  ;;  %v591_v29 = vadd.f32 %v538_v15, %v2700_v21  ;;  %v579_v60 = vpop.f32.mrb[6].mxu1  ;;  %v116_v15 = vrot.slane %v103_v4, %v115_v58  ;;  %v633_v55 = vrot.slane %v2627_v50, 1 }
 0x14c   :  { %v592_v23 = vadd.f32 %v584_v18, %v2697_v17  ;;  %v1827_v24 = vmul.f32 -1.442695, %v590_v19  ;;  %v1979_v62 = vpop.f32.mrb[7].mxu1  ;;  %v619_v19 = vrot.slane %v577_v13, 1 }
 0x14d   :  { %v593_v33 = vadd.f32 %v585_v22, %v2703_v26  ;;  %v1828_v57 = vmul.f32 -1.442695, %v591_v29  ;;  %v2710_v22 = vadd.f32 %v315_v59, %v116_v15  ;;  %v2712_v2 = vadd.f32 %v318_v61, %v116_v15 }
 0x14e   :  { %2189 = vpow2.f32 %v1827_v24  ;;  %v1829_v30 = vmul.f32 -1.442695, %v592_v23 }
 0x14f   :  { %v1830_v56 = vmul.f32 -1.442695, %v593_v33 }
 0x150   :  { %2191 = vpow2.f32 %v1829_v30 }
 0x151   :  { %2193 = vpow2.f32 %v1828_v57 }
 0x152   :  { %2195 = vpow2.f32 %v1830_v56 }
 0x158   :  { %v2190_v63 = vpop.eup %2189 }
 0x159   :  { %v606_v3 = vadd.f32 1.0, %v2190_v63 }
 0x15a   :  { %v2192_v6 = vpop.eup %2191 }
 0x15b   :  { %v608_v7 = vadd.f32 1.0, %v2192_v6  ;;  %2197 = vrcp.f32 %v606_v3  ;;  %v2194_v11 = vpop.eup %2193 }
 0x15c   :  { %v2196_v14 = vpop.eup %2195  ;;  %v607_v16 = vadd.f32 1.0, %v2194_v11 }
 0x15d   :  { %2199 = vrcp.f32 %v608_v7  ;;  %v609_v18 = vadd.f32 1.0, %v2196_v14 }
 0x15e   :  { %2201 = vrcp.f32 %v607_v16 }
 0x15f   :  { %2203 = vrcp.f32 %v609_v18 }
 0x165   :  { %v2198_v20 = vpop.eup %2197 }
 0x166   :  { %v622_v23 = vmul.f32 %v2198_v20, %v577_v13 }
 0x167   :  { %v2200_v24 = vpop.eup %2199 }
 0x168   :  { %v623_v5 = vmul.f32 %v2200_v24, %v619_v19  ;;  %v624_v29 = vadd.f32 %v622_v23, %v2710_v22  ;;  %v2202_v4 = vpop.eup %2201 }
 0x169   :  { %v2204_v33 = vpop.eup %2203  ;;  %v628_v52 = vsub.f32 1.0, %v2202_v4  ;;  %v636_v62 = vmul.f32 %v2202_v4, %v2627_v50 }
 0x16a   :  { %v625_v30 = vadd.f32 %v623_v5, %v2712_v2  ;;  %2205 = vtanh.f32 %v624_v29  ;;  %v629_v60 = vsub.f32 1.0, %v2204_v33  ;;  %v637_v63 = vmul.f32 %v2204_v33, %v633_v55 }
 0x16c   :  { %2207 = vtanh.f32 %v625_v30 }
 0x174   :  { %v2206_v59 = vpop.eup %2205 }
 0x175   :  { %v630_v57 = vmul.f32 %v2206_v59, %v628_v52 }
 0x176   :  { %v2208_v61 = vpop.eup %2207 }
 0x177   :  { %v631_v56 = vmul.f32 %v2208_v61, %v629_v60  ;;  %v2718_v3 = vadd.f32 %v636_v62, %v630_v57 }
 0x179   :  { %v2720_v6 = vadd.f32 %v637_v63, %v631_v56  ;;  %v640_v58 = vpack.c.bf16 %v2718_v3, %v2718_v3 }
 0x17b   :  { %v641_v7 = vpack.c.bf16 %v2720_v6, %v2720_v6  ;;  %v644_v13 = vunpack.c.l.b16 %v640_v58 }
 0x17d   :  { %v645_v11 = vunpack.c.l.b16 %v641_v7 }
 0x17f   :  { %v646_v14 = vrot.slane %v645_v11, 7 }
 0x181   :  { %v648_v15 = vsel %vm647_vm3, %v646_v14, %v644_v13 }
 0x182   :  { %v649_v50 = vpack.c.b16 %v648_v15, %v648_v15 }
 0x184   :  { %684 = vmatmul.mubr.bf16.vlgmr.msra.gmra.mrb[8].mxu0 %v649_v50  ;;  %1997 = vmatmul.mubr.bf16.vlgmr.msra.gmra.mrb[8].mxu1 %v649_v50 }
 0x185   :  { %803 = vmatpush1.bf16.msra.mxu0 %v2556_v27  ;;  %2001 = vmatpush3.bf16.msra.mxu1 %v2575_v35 }
 0x186   :  { %804 = vmatprep.subr.bf16.mxu0 %v2558_v28  ;;  %2002 = vmatprep.subr.bf16.mxu1 %v2458_v0 }
 0x187   :  { %834 = vmatprep.mubr.bf16.mxu0 %v2459_v1  ;;  %2016 = vmatprep.mubr.msk.bf16.mxu1 %vm2460_vm0, %v2458_v0 }
 0x189   :  { %805 = vmatpush1.bf16.msra.mxu0 %v2563_v31  ;;  %2003 = vmatpush3.bf16.msra.mxu1 %v2586_v38 }
 0x18a   :  { %806 = vmatprep.subr.bf16.mxu0 %v2566_v32  ;;  %2004 = vmatprep.subr.bf16.mxu1 %v2458_v0 }
 0x18d   :  { %807 = vmatpush1.bf16.msra.mxu0 %v2573_v34  ;;  %2005 = vmatpush3.bf16.msra.mxu1 %v2598_v41 }
 0x18e   :  { %808 = vmatprep.subr.bf16.mxu0 %v2578_v36  ;;  %2006 = vmatprep.subr.bf16.mxu1 %v2458_v0 }
 0x191   :  { %809 = vmatpush1.bf16.msra.mxu0 %v2583_v37  ;;  %2007 = vmatpush3.bf16.msra.mxu1 %v2608_v44 }
 0x192   :  { %810 = vmatprep.subr.bf16.mxu0 %v2589_v39  ;;  %2008 = vmatprep.subr.bf16.mxu1 %v2458_v0 }
 0x195   :  { %811 = vmatpush1.bf16.msra.mxu0 %v2595_v40  ;;  %2009 = vmatpush3.bf16.msra.mxu1 %v2618_v47 }
 0x196   :  { %812 = vmatprep.subr.bf16.mxu0 %v2601_v42  ;;  %2010 = vmatprep.subr.bf16.mxu1 %v2458_v0 }
 0x199   :  { %813 = vmatpush1.bf16.msra.mxu0 %v2605_v43  ;;  %2011 = vmatpush3.bf16.msra.mxu1 %v2630_v51 }
 0x19a   :  { %814 = vmatprep.subr.bf16.mxu0 %v2611_v45  ;;  %2012 = vmatprep.subr.bf16.mxu1 %v2458_v0 }
 0x19d   :  { %815 = vmatpush1.bf16.msra.mxu0 %v2615_v46  ;;  %2013 = vmatpush3.bf16.msra.mxu1 %v2638_v53 }
 0x19e   :  { %816 = vmatprep.subr.bf16.mxu0 %v2621_v48  ;;  %2014 = vmatprep.subr.bf16.mxu1 %v2458_v0 }
 0x1a1   :  { %817 = vmatpush1.bf16.msra.mxu0 %v2625_v49  ;;  %2015 = vmatpush3.bf16.msra.mxu1 %v2643_v54 }
 0x1a2   :  { %957 = vmatprep.subr.bf16.mxu0 %v2553_v25  ;;  %2020 = vmatprep.subr.bf16.mxu1 %v2458_v0 }
 0x257   :  { %v685_v16 = vpop.f32.mrb[8].mxu0  ;;  %v726_v18 = vpop.f32.mrb[8].mxu1 }
 0x258   :  { %v686_v19 = vadd.f32 %v685_v16, %v2689_v8  ;;  %v687_v20 = vpop.f32.mrb[9].mxu0  ;;  %v1998_v23 = vpop.f32.mrb[9].mxu1 }
 0x259   :  { %v688_v24 = vadd.f32 %v687_v20, %v2691_v9  ;;  %v689_v5 = vpop.f32.mrb[10].mxu0  ;;  %v729_v29 = vpop.f32.mrb[10].mxu1  ;;  %v785_v23 = vrot.slane %v2720_v6, 7 }
 0x25a   :  { %v734_v30 = vrot.slane %v686_v19, 7  ;;  %v742_v4 = vadd.f32 %v686_v19, %v2697_v17  ;;  %v690_v33 = vpop.f32.mrb[11].mxu0  ;;  %v1999_v52 = vpop.f32.mrb[11].mxu1  ;;  %v727_v19 = vadd.f32 %v726_v18, %v2707_v10 }
 0x25b   :  { %v735_v55 = vrot.slane %v688_v24, 7  ;;  %v743_v59 = vadd.f32 %v688_v24, %v2703_v26 }
 0x25c   :  { %v740_v57 = vadd.f32 %v734_v30, %v2693_v12  ;;  %v1833_v60 = vmul.f32 -1.442695, %v742_v4  ;;  %v769_v5 = vrot.slane %v727_v19, 7  ;;  %v784_v4 = vrot.slane %v2718_v3, 7 }
 0x25d   :  { %v741_v62 = vadd.f32 %v735_v55, %v2700_v21  ;;  %v1834_v61 = vmul.f32 -1.442695, %v743_v59 }
 0x25e   :  { %v1831_v56 = vmul.f32 -1.442695, %v740_v57  ;;  %2209 = vpow2.f32 %v1833_v60 }
 0x25f   :  { %v1832_v63 = vmul.f32 -1.442695, %v741_v62  ;;  %2211 = vpow2.f32 %v1834_v61 }
 0x260   :  { %2213 = vpow2.f32 %v1831_v56 }
 0x261   :  { %2215 = vpow2.f32 %v1832_v63 }
 0x268   :  { %v2210_v58 = vpop.eup %2209 }
 0x269   :  { %v2212_v7 = vpop.eup %2211  ;;  %v758_v11 = vadd.f32 1.0, %v2210_v58 }
 0x26a   :  { %v2214_v13 = vpop.eup %2213  ;;  %v759_v14 = vadd.f32 1.0, %v2212_v7 }
 0x26b   :  { %v2216_v15 = vpop.eup %2215  ;;  %v756_v50 = vadd.f32 1.0, %v2214_v13  ;;  %2217 = vrcp.f32 %v758_v11 }
 0x26c   :  { %v757_v16 = vadd.f32 1.0, %v2216_v15  ;;  %2219 = vrcp.f32 %v759_v14 }
 0x26d   :  { %2221 = vrcp.f32 %v756_v50 }
 0x26e   :  { %2223 = vrcp.f32 %v757_v16 }
 0x275   :  { %v2218_v20 = vpop.eup %2217 }
 0x276   :  { %v2220_v24 = vpop.eup %2219  ;;  %v773_v29 = vmul.f32 %v2218_v20, %v727_v19 }
 0x277   :  { %v2222_v30 = vpop.eup %2221  ;;  %v789_v33 = vmul.f32 %v2220_v24, %v785_v23  ;;  %v779_v18 = vsub.f32 1.0, %v2220_v24 }
 0x278   :  { %v2224_v52 = vpop.eup %2223  ;;  %v772_v55 = vmul.f32 %v2222_v30, %v769_v5  ;;  %v775_v59 = vadd.f32 %v773_v29, %v2712_v2 }
 0x279   :  { %v788_v57 = vmul.f32 %v2224_v52, %v784_v4  ;;  %v778_v61 = vsub.f32 1.0, %v2224_v52 }
 0x27a   :  { %v774_v60 = vadd.f32 %v772_v55, %v2710_v22  ;;  %2225 = vtanh.f32 %v775_v59 }
 0x27c   :  { %2227 = vtanh.f32 %v774_v60 }
 0x284   :  { %v2226_v62 = vpop.eup %2225 }
 0x285   :  { %v781_v6 = vmul.f32 %v2226_v62, %v779_v18 }
 0x286   :  { %v2228_v56 = vpop.eup %2227 }
 0x287   :  { %v780_v63 = vmul.f32 %v2228_v56, %v778_v61  ;;  %v2773_v58 = vadd.f32 %v789_v33, %v781_v6 }
 0x289   :  { %v2775_v7 = vadd.f32 %v788_v57, %v780_v63  ;;  %v793_v11 = vpack.c.bf16 %v2773_v58, %v2773_v58 }
 0x28b   :  { %v792_v3 = vpack.c.bf16 %v2775_v7, %v2775_v7  ;;  %v797_v14 = vunpack.c.l.b16 %v793_v11 }
 0x28d   :  { %v796_v13 = vunpack.c.l.b16 %v792_v3 }
 0x28f   :  { %v798_v15 = vrot.slane %v796_v13, 1 }
 0x291   :  { %v799_v50 = vsel %vm647_vm3, %v797_v14, %v798_v15 }
 0x292   :  { %v800_v16 = vpack.c.b16 %v799_v50, %v799_v50 }
 0x294   :  { %835 = vmatmul.mubr.bf16.vlgmr.msra.gmra.mrb[12].mxu0 %v800_v16  ;;  %2017 = vmatmul.mubr.bf16.vlgmr.msra.gmra.mrb[12].mxu1 %v800_v16 }
 0x295   :  { %958 = vmatpush1.bf16.msra.mxu0 %v2556_v27  ;;  %2021 = vmatpush3.bf16.msra.mxu1 %v2575_v35 }
 0x296   :  { %959 = vmatprep.subr.bf16.mxu0 %v2558_v28  ;;  %2022 = vmatprep.subr.bf16.mxu1 %v2458_v0 }
 0x297   :  { %989 = vmatprep.mubr.bf16.mxu0 %v2459_v1  ;;  %2036 = vmatprep.mubr.msk.bf16.mxu1 %vm2460_vm0, %v2458_v0 }
 0x299   :  { %960 = vmatpush1.bf16.msra.mxu0 %v2563_v31  ;;  %2023 = vmatpush3.bf16.msra.mxu1 %v2586_v38 }
 0x29a   :  { %961 = vmatprep.subr.bf16.mxu0 %v2566_v32  ;;  %2024 = vmatprep.subr.bf16.mxu1 %v2458_v0 }
 0x29d   :  { %962 = vmatpush1.bf16.msra.mxu0 %v2573_v34  ;;  %2025 = vmatpush3.bf16.msra.mxu1 %v2598_v41 }
 0x29e   :  { %963 = vmatprep.subr.bf16.mxu0 %v2578_v36  ;;  %2026 = vmatprep.subr.bf16.mxu1 %v2458_v0 }
 0x2a1   :  { %964 = vmatpush1.bf16.msra.mxu0 %v2583_v37  ;;  %2027 = vmatpush3.bf16.msra.mxu1 %v2608_v44 }
 0x2a2   :  { %965 = vmatprep.subr.bf16.mxu0 %v2589_v39  ;;  %2028 = vmatprep.subr.bf16.mxu1 %v2458_v0 }
 0x2a5   :  { %966 = vmatpush1.bf16.msra.mxu0 %v2595_v40  ;;  %2029 = vmatpush3.bf16.msra.mxu1 %v2618_v47 }
 0x2a6   :  { %967 = vmatprep.subr.bf16.mxu0 %v2601_v42  ;;  %2030 = vmatprep.subr.bf16.mxu1 %v2458_v0 }
 0x2a9   :  { %968 = vmatpush1.bf16.msra.mxu0 %v2605_v43  ;;  %2031 = vmatpush3.bf16.msra.mxu1 %v2630_v51 }
 0x2aa   :  { %969 = vmatprep.subr.bf16.mxu0 %v2611_v45  ;;  %2032 = vmatprep.subr.bf16.mxu1 %v2458_v0 }
 0x2ad   :  { %970 = vmatpush1.bf16.msra.mxu0 %v2615_v46  ;;  %2033 = vmatpush3.bf16.msra.mxu1 %v2638_v53 }
 0x2ae   :  { %971 = vmatprep.subr.bf16.mxu0 %v2621_v48  ;;  %2034 = vmatprep.subr.bf16.mxu1 %v2458_v0 }
 0x2b1   :  { %972 = vmatpush1.bf16.msra.mxu0 %v2625_v49  ;;  %2035 = vmatpush3.bf16.msra.mxu1 %v2643_v54 }
 0x2b2   :  { %1112 = vmatprep.subr.bf16.mxu0 %v2553_v25  ;;  %2040 = vmatprep.subr.bf16.mxu1 %v2458_v0 }
 0x367   :  { %v836_v19 = vpop.f32.mrb[12].mxu0  ;;  %v877_v20 = vpop.f32.mrb[12].mxu1 }
 0x368   :  { %v837_v23 = vadd.f32 %v836_v19, %v2689_v8  ;;  %v838_v24 = vpop.f32.mrb[13].mxu0  ;;  %v2018_v5 = vpop.f32.mrb[13].mxu1 }
 0x369   :  { %v839_v29 = vadd.f32 %v838_v24, %v2691_v9  ;;  %v840_v30 = vpop.f32.mrb[14].mxu0  ;;  %v880_v4 = vpop.f32.mrb[14].mxu1  ;;  %v878_v5 = vadd.f32 %v877_v20, %v2707_v10 }
 0x36a   :  { %v885_v33 = vrot.slane %v837_v23, 6  ;;  %v887_v52 = vrot.slane %v837_v23, 7  ;;  %v841_v55 = vpop.f32.mrb[15].mxu0  ;;  %v2019_v59 = vpop.f32.mrb[15].mxu1 }
 0x36b   :  { %v886_v57 = vrot.slane %v839_v29, 6  ;;  %v888_v60 = vrot.slane %v839_v29, 7  ;;  %v922_v29 = vrot.slane %v878_v5, 6  ;;  %v923_v4 = vrot.slane %v878_v5, 7 }
 0x36c   :  { %v893_v18 = vadd.f32 %v885_v33, %v2693_v12  ;;  %v895_v62 = vadd.f32 %v887_v52, %v2697_v17  ;;  %v938_v52 = vrot.slane %v2775_v7, 7 }
 0x36d   :  { %v894_v61 = vadd.f32 %v886_v57, %v2700_v21  ;;  %v896_v6 = vadd.f32 %v888_v60, %v2703_v26  ;;  %v939_v57 = vrot.slane %v2773_v58, 7 }
 0x36e   :  { %v1835_v56 = vmul.f32 -1.442695, %v893_v18  ;;  %v1837_v63 = vmul.f32 -1.442695, %v895_v62 }
 0x36f   :  { %v1836_v3 = vmul.f32 -1.442695, %v894_v61  ;;  %v1838_v11 = vmul.f32 -1.442695, %v896_v6 }
 0x370   :  { %2229 = vpow2.f32 %v1835_v56 }
 0x371   :  { %2231 = vpow2.f32 %v1837_v63 }
 0x372   :  { %2233 = vpow2.f32 %v1836_v3 }
 0x373   :  { %2235 = vpow2.f32 %v1838_v11 }
 0x37a   :  { %v2230_v13 = vpop.eup %2229 }
 0x37b   :  { %v2232_v14 = vpop.eup %2231  ;;  %v909_v15 = vadd.f32 1.0, %v2230_v13 }
 0x37c   :  { %v2234_v50 = vpop.eup %2233  ;;  %v911_v16 = vadd.f32 1.0, %v2232_v14 }
 0x37d   :  { %v2236_v19 = vpop.eup %2235  ;;  %2237 = vrcp.f32 %v909_v15  ;;  %v910_v23 = vadd.f32 1.0, %v2234_v50 }
 0x37e   :  { %2239 = vrcp.f32 %v911_v16  ;;  %v912_v24 = vadd.f32 1.0, %v2236_v19 }
 0x37f   :  { %2241 = vrcp.f32 %v910_v23 }
 0x380   :  { %2243 = vrcp.f32 %v912_v24 }
 0x387   :  { %v2238_v30 = vpop.eup %2237 }
 0x388   :  { %v2240_v33 = vpop.eup %2239  ;;  %v926_v55 = vmul.f32 %v2238_v30, %v922_v29 }
 0x389   :  { %v2242_v59 = vpop.eup %2241  ;;  %v927_v60 = vmul.f32 %v2240_v33, %v923_v4 }
 0x38a   :  { %v2244_v18 = vpop.eup %2243  ;;  %v928_v62 = vadd.f32 %v926_v55, %v2710_v22  ;;  %v942_v61 = vmul.f32 %v2242_v59, %v938_v52  ;;  %v932_v20 = vsub.f32 1.0, %v2242_v59 }
 0x38b   :  { %v929_v6 = vadd.f32 %v927_v60, %v2712_v2  ;;  %v943_v56 = vmul.f32 %v2244_v18, %v939_v57  ;;  %v933_v3 = vsub.f32 1.0, %v2244_v18 }
 0x38c   :  { %2245 = vtanh.f32 %v928_v62 }
 0x38d   :  { %2247 = vtanh.f32 %v929_v6 }
 0x396   :  { %v2246_v63 = vpop.eup %2245 }
 0x397   :  { %v2248_v11 = vpop.eup %2247  ;;  %v934_v13 = vmul.f32 %v2246_v63, %v932_v20 }
 0x398   :  { %v935_v7 = vmul.f32 %v2248_v11, %v933_v3 }
 0x399   :  { %v2828_v14 = vadd.f32 %v942_v61, %v934_v13 }
 0x39a   :  { %v2830_v15 = vadd.f32 %v943_v56, %v935_v7 }
 0x39b   :  { %v946_v58 = vpack.c.bf16 %v2828_v14, %v2828_v14 }
 0x39c   :  { %v947_v50 = vpack.c.bf16 %v2830_v15, %v2830_v15 }
 0x39d   :  { %v950_v16 = vunpack.c.l.b16 %v946_v58 }
 0x39e   :  { %v951_v19 = vunpack.c.l.b16 %v947_v50 }
 0x39f   :  { %v952_v23 = vrot.slane %v950_v16, 2 }
 0x3a0   :  { %v953_v24 = vrot.slane %v951_v19, 1 }
 0x3a2   :  { %v954_v5 = vsel %vm647_vm3, %v953_v24, %v952_v23 }
 0x3a3   :  { %v955_v29 = vpack.c.b16 %v954_v5, %v954_v5 }
 0x3a5   :  { %990 = vmatmul.mubr.bf16.vlgmr.msra.gmra.mrb[16].mxu0 %v955_v29  ;;  %2037 = vmatmul.mubr.bf16.vlgmr.msra.gmra.mrb[16].mxu1 %v955_v29 }
 0x3a6   :  { %1113 = vmatpush1.bf16.msra.mxu0 %v2556_v27  ;;  %2041 = vmatpush3.bf16.msra.mxu1 %v2575_v35 }
 0x3a7   :  { %1114 = vmatprep.subr.bf16.mxu0 %v2558_v28  ;;  %2042 = vmatprep.subr.bf16.mxu1 %v2458_v0 }
 0x3a8   :  { %1144 = vmatprep.mubr.bf16.mxu0 %v2459_v1  ;;  %2056 = vmatprep.mubr.msk.bf16.mxu1 %vm2460_vm0, %v2458_v0 }
 0x3aa   :  { %1115 = vmatpush1.bf16.msra.mxu0 %v2563_v31  ;;  %2043 = vmatpush3.bf16.msra.mxu1 %v2586_v38 }
 0x3ab   :  { %1116 = vmatprep.subr.bf16.mxu0 %v2566_v32  ;;  %2044 = vmatprep.subr.bf16.mxu1 %v2458_v0 }
 0x3ae   :  { %1117 = vmatpush1.bf16.msra.mxu0 %v2573_v34  ;;  %2045 = vmatpush3.bf16.msra.mxu1 %v2598_v41 }
 0x3af   :  { %1118 = vmatprep.subr.bf16.mxu0 %v2578_v36  ;;  %2046 = vmatprep.subr.bf16.mxu1 %v2458_v0 }
 0x3b2   :  { %1119 = vmatpush1.bf16.msra.mxu0 %v2583_v37  ;;  %2047 = vmatpush3.bf16.msra.mxu1 %v2608_v44 }
 0x3b3   :  { %1120 = vmatprep.subr.bf16.mxu0 %v2589_v39  ;;  %2048 = vmatprep.subr.bf16.mxu1 %v2458_v0 }
 0x3b6   :  { %1121 = vmatpush1.bf16.msra.mxu0 %v2595_v40  ;;  %2049 = vmatpush3.bf16.msra.mxu1 %v2618_v47 }
 0x3b7   :  { %1122 = vmatprep.subr.bf16.mxu0 %v2601_v42  ;;  %2050 = vmatprep.subr.bf16.mxu1 %v2458_v0 }
 0x3ba   :  { %1123 = vmatpush1.bf16.msra.mxu0 %v2605_v43  ;;  %2051 = vmatpush3.bf16.msra.mxu1 %v2630_v51 }
 0x3bb   :  { %1124 = vmatprep.subr.bf16.mxu0 %v2611_v45  ;;  %2052 = vmatprep.subr.bf16.mxu1 %v2458_v0 }
 0x3be   :  { %1125 = vmatpush1.bf16.msra.mxu0 %v2615_v46  ;;  %2053 = vmatpush3.bf16.msra.mxu1 %v2638_v53 }
 0x3bf   :  { %1126 = vmatprep.subr.bf16.mxu0 %v2621_v48  ;;  %2054 = vmatprep.subr.bf16.mxu1 %v2458_v0 }
 0x3c2   :  { %1127 = vmatpush1.bf16.msra.mxu0 %v2625_v49  ;;  %2055 = vmatpush3.bf16.msra.mxu1 %v2643_v54 }
 0x3c3   :  { %1267 = vmatprep.subr.bf16.mxu0 %v2553_v25  ;;  %2060 = vmatprep.subr.bf16.mxu1 %v2458_v0 }
 0x478   :  { %v991_v27 = vpop.f32.mrb[16].mxu0  ;;  %v1032_v28 = vpop.f32.mrb[16].mxu1 }
 0x479   :  { %v992_v31 = vadd.f32 %v991_v27, %v2689_v8  ;;  %v993_v32 = vpop.f32.mrb[17].mxu0  ;;  %v2038_v34 = vpop.f32.mrb[17].mxu1  ;;  %v1033_v24 = vadd.f32 %v1032_v28, %v2707_v10 }
 0x47a   :  { %v994_v30 = vadd.f32 %v993_v32, %v2691_v9  ;;  %v995_v4 = vpop.f32.mrb[18].mxu0  ;;  %v1035_v33 = vpop.f32.mrb[18].mxu1  ;;  %v1093_v32 = vrot.slane %v2828_v14, 7 }
 0x47b   :  { %v1040_v52 = vrot.slane %v992_v31, 5  ;;  %v1042_v55 = vrot.slane %v992_v31, 6  ;;  %v996_v59 = vpop.f32.mrb[19].mxu0  ;;  %v2039_v57 = vpop.f32.mrb[19].mxu1  ;;  %v1077_v5 = vrot.slane %v1033_v24, 5  ;;  %v1078_v27 = vrot.slane %v1033_v24, 6 }
 0x47c   :  { %v1041_v60 = vrot.slane %v994_v30, 5  ;;  %v1043_v18 = vrot.slane %v994_v30, 6  ;;  %v1094_v4 = vrot.slane %v2830_v15, 7 }
 0x47d   :  { %v1048_v25 = vadd.f32 %v1040_v52, %v2693_v12  ;;  %v1050_v62 = vadd.f32 %v1042_v55, %v2697_v17 }
 0x47e   :  { %v1049_v61 = vadd.f32 %v1041_v60, %v2700_v21  ;;  %v1051_v6 = vadd.f32 %v1043_v18, %v2703_v26 }
 0x47f   :  { %v1839_v56 = vmul.f32 -1.442695, %v1048_v25  ;;  %v1841_v20 = vmul.f32 -1.442695, %v1050_v62 }
 0x480   :  { %v1840_v63 = vmul.f32 -1.442695, %v1049_v61  ;;  %v1842_v3 = vmul.f32 -1.442695, %v1051_v6 }
 0x481   :  { %2249 = vpow2.f32 %v1839_v56 }
 0x482   :  { %2251 = vpow2.f32 %v1841_v20 }
 0x483   :  { %2253 = vpow2.f32 %v1840_v63 }
 0x484   :  { %2255 = vpow2.f32 %v1842_v3 }
 0x48b   :  { %v2250_v11 = vpop.eup %2249 }
 0x48c   :  { %v2252_v13 = vpop.eup %2251  ;;  %v1064_v7 = vadd.f32 1.0, %v2250_v11 }
 0x48d   :  { %v2254_v58 = vpop.eup %2253  ;;  %v1066_v50 = vadd.f32 1.0, %v2252_v13 }
 0x48e   :  { %v2256_v16 = vpop.eup %2255  ;;  %2257 = vrcp.f32 %v1064_v7  ;;  %v1065_v19 = vadd.f32 1.0, %v2254_v58 }
 0x48f   :  { %2259 = vrcp.f32 %v1066_v50  ;;  %v1067_v23 = vadd.f32 1.0, %v2256_v16  ;;  %v2892_v50 = vld [vmem:[#allocation8] ss:$12 sps:$4 sm:$0xff]   ;;  %v2896_v16 = vld [vmem:[#allocation8 + $0x1c] ss:$12 sps:$4 sm:$0xff]  }
 0x490   :  { %2261 = vrcp.f32 %v1065_v19  ;;  %v2903_v19 = vld [vmem:[#allocation8 + $0x18] ss:$12 sps:$4 sm:$0xff]  }
 0x491   :  { %2263 = vrcp.f32 %v1067_v23  ;;  %v2907_v23 = vld [vmem:[#allocation8 + $0x34] ss:$12 sps:$4 sm:$0xff]  }
 0x498   :  { %v2258_v29 = vpop.eup %2257 }
 0x499   :  { %v2260_v31 = vpop.eup %2259  ;;  %v1081_v34 = vmul.f32 %v2258_v29, %v1077_v5 }
 0x49a   :  { %v2262_v30 = vpop.eup %2261  ;;  %v1082_v33 = vmul.f32 %v2260_v31, %v1078_v27 }
 0x49b   :  { %v2264_v52 = vpop.eup %2263  ;;  %v1083_v55 = vadd.f32 %v1081_v34, %v2710_v22  ;;  %v1097_v59 = vmul.f32 %v2262_v30, %v1093_v32  ;;  %v1087_v28 = vsub.f32 1.0, %v2262_v30 }
 0x49c   :  { %v1084_v57 = vadd.f32 %v1082_v33, %v2712_v2  ;;  %v1098_v60 = vmul.f32 %v2264_v52, %v1094_v4  ;;  %v1088_v25 = vsub.f32 1.0, %v2264_v52 }
 0x49d   :  { %2265 = vtanh.f32 %v1083_v55 }
 0x49e   :  { %2267 = vtanh.f32 %v1084_v57 }
 0x4a7   :  { %v2266_v18 = vpop.eup %2265 }
 0x4a8   :  { %v2268_v62 = vpop.eup %2267  ;;  %v1089_v61 = vmul.f32 %v2266_v18, %v1087_v28 }
 0x4a9   :  { %v1090_v14 = vmul.f32 %v2268_v62, %v1088_v25 }
 0x4aa   :  { %v2883_v6 = vadd.f32 %v1097_v59, %v1089_v61 }
 0x4ab   :  { %v2885_v56 = vadd.f32 %v1098_v60, %v1090_v14 }
 0x4ac   :  { %v1101_v15 = vpack.c.bf16 %v2883_v6, %v2883_v6  ;;  %v1248_v61 = vrot.slane %v2883_v6, 7 }
 0x4ad   :  { %v1102_v20 = vpack.c.bf16 %v2885_v56, %v2885_v56 }
 0x4ae   :  { %v1105_v63 = vunpack.c.l.b16 %v1101_v15 }
 0x4af   :  { %v1106_v3 = vunpack.c.l.b16 %v1102_v20  ;;  %v1249_v20 = vrot.slane %v2885_v56, 7 }
 0x4b0   :  { %v1107_v11 = vrot.slane %v1105_v63, 3 }
 0x4b1   :  { %v1108_v13 = vrot.slane %v1106_v3, 2 }
 0x4b3   :  { %v1109_v7 = vsel %vm647_vm3, %v1108_v13, %v1107_v11 }
 0x4b4   :  { %v1110_v58 = vpack.c.b16 %v1109_v7, %v1109_v7 }
 0x4b6   :  { %1145 = vmatmul.mubr.bf16.vlgmr.msra.gmra.mrb[20].mxu0 %v1110_v58  ;;  %2057 = vmatmul.mubr.bf16.vlgmr.msra.gmra.mrb[20].mxu1 %v1110_v58 }
 0x4b7   :  { %1268 = vmatpush1.bf16.msra.mxu0 %v2892_v50  ;;  %2061 = vmatpush3.bf16.msra.mxu1 %v2575_v35  ;;  %v2911_v35 = vld [vmem:[#allocation8 + $0x30] ss:$12 sps:$4 sm:$0xff]  }
 0x4b8   :  { %1269 = vmatprep.subr.bf16.mxu0 %v2896_v16  ;;  %2062 = vmatprep.subr.bf16.mxu1 %v2458_v0 }
 0x4b9   :  { %1299 = vmatprep.mubr.bf16.mxu0 %v2459_v1  ;;  %2076 = vmatprep.mubr.msk.bf16.mxu1 %vm2460_vm0, %v2458_v0 }
 0x4bb   :  { %1270 = vmatpush1.bf16.msra.mxu0 %v2903_v19  ;;  %2063 = vmatpush3.bf16.msra.mxu1 %v2586_v38 }
 0x4bc   :  { %1271 = vmatprep.subr.bf16.mxu0 %v2907_v23  ;;  %2064 = vmatprep.subr.bf16.mxu1 %v2458_v0 }
 0x4bf   :  { %1272 = vmatpush1.bf16.msra.mxu0 %v2911_v35  ;;  %2065 = vmatpush3.bf16.msra.mxu1 %v2598_v41 }
 0x4c0   :  { %1273 = vmatprep.subr.bf16.mxu0 %v2578_v36  ;;  %2066 = vmatprep.subr.bf16.mxu1 %v2458_v0  ;;  %v2935_v36 = vld [vmem:[#allocation8 + $0x4] ss:$12 sps:$4 sm:$0xff]  }
 0x4c3   :  { %1274 = vmatpush1.bf16.msra.mxu0 %v2583_v37  ;;  %2067 = vmatpush3.bf16.msra.mxu1 %v2608_v44 }
 0x4c4   :  { %1275 = vmatprep.subr.bf16.mxu0 %v2589_v39  ;;  %2068 = vmatprep.subr.bf16.mxu1 %v2458_v0 }
 0x4c7   :  { %1276 = vmatpush1.bf16.msra.mxu0 %v2595_v40  ;;  %2069 = vmatpush3.bf16.msra.mxu1 %v2618_v47 }
 0x4c8   :  { %1277 = vmatprep.subr.bf16.mxu0 %v2601_v42  ;;  %2070 = vmatprep.subr.bf16.mxu1 %v2458_v0 }
 0x4cb   :  { %1278 = vmatpush1.bf16.msra.mxu0 %v2605_v43  ;;  %2071 = vmatpush3.bf16.msra.mxu1 %v2630_v51 }
 0x4cc   :  { %1279 = vmatprep.subr.bf16.mxu0 %v2611_v45  ;;  %2072 = vmatprep.subr.bf16.mxu1 %v2458_v0 }
 0x4cf   :  { %1280 = vmatpush1.bf16.msra.mxu0 %v2615_v46  ;;  %2073 = vmatpush3.bf16.msra.mxu1 %v2638_v53 }
 0x4d0   :  { %1281 = vmatprep.subr.bf16.mxu0 %v2621_v48  ;;  %2074 = vmatprep.subr.bf16.mxu1 %v2458_v0 }
 0x4d3   :  { %1282 = vmatpush1.bf16.msra.mxu0 %v2625_v49  ;;  %2075 = vmatpush3.bf16.msra.mxu1 %v2643_v54 }
 0x4d4   :  { %1422 = vmatprep.subr.bf16.mxu0 %v2935_v36  ;;  %2080 = vmatprep.subr.bf16.mxu1 %v2458_v0 }
 0x589   :  { %v1146_v37 = vpop.f32.mrb[20].mxu0  ;;  %v1187_v38 = vpop.f32.mrb[20].mxu1 }
 0x58a   :  { %v1147_v39 = vadd.f32 %v1146_v37, %v2689_v8  ;;  %v1148_v40 = vpop.f32.mrb[21].mxu0  ;;  %v2058_v41 = vpop.f32.mrb[21].mxu1  ;;  %v1188_v60 = vadd.f32 %v1187_v38, %v2707_v10 }
 0x58b   :  { %v1149_v42 = vadd.f32 %v1148_v40, %v2691_v9  ;;  %v1150_v43 = vpop.f32.mrb[22].mxu0  ;;  %v1190_v44 = vpop.f32.mrb[22].mxu1 }
 0x58c   :  { %v1195_v45 = vrot.slane %v1147_v39, 4  ;;  %v1197_v46 = vrot.slane %v1147_v39, 5  ;;  %v1151_v47 = vpop.f32.mrb[23].mxu0  ;;  %v2059_v48 = vpop.f32.mrb[23].mxu1  ;;  %v1232_v28 = vrot.slane %v1188_v60, 4  ;;  %v1233_v25 = vrot.slane %v1188_v60, 5 }
 0x58d   :  { %v1196_v49 = vrot.slane %v1149_v42, 4  ;;  %v1198_v51 = vrot.slane %v1149_v42, 5  ;;  %v3022_v60 = vld [vmem:[#allocation8 + $0xa8] ss:$12 sps:$4 sm:$0xff]  }
 0x58e   :  { %v1203_v53 = vadd.f32 %v1195_v45, %v2693_v12  ;;  %v1205_v54 = vadd.f32 %v1197_v46, %v2697_v17 }
 0x58f   :  { %v1204_v24 = vadd.f32 %v1196_v49, %v2700_v21  ;;  %v1206_v5 = vadd.f32 %v1198_v51, %v2703_v26 }
 0x590   :  { %v1843_v29 = vmul.f32 -1.442695, %v1203_v53  ;;  %v1845_v27 = vmul.f32 -1.442695, %v1205_v54  ;;  %v2960_v53 = vld [vmem:[#allocation8 + $0x8] ss:$12 sps:$4 sm:$0xff]  }
 0x591   :  { %v1844_v31 = vmul.f32 -1.442695, %v1204_v24  ;;  %v1846_v32 = vmul.f32 -1.442695, %v1206_v5  ;;  %v2969_v54 = vld [vmem:[#allocation8 + $0x20] ss:$12 sps:$4 sm:$0xff]  }
 0x592   :  { %2269 = vpow2.f32 %v1843_v29  ;;  %v2975_v24 = vld [vmem:[#allocation8 + $0x38] ss:$12 sps:$4 sm:$0xff]   ;;  %v2982_v29 = vld [vmem:[#allocation8 + $0x48] ss:$12 sps:$4 sm:$0xff]  }
 0x593   :  { %2271 = vpow2.f32 %v1845_v27  ;;  %v2978_v5 = vld [vmem:[#allocation8 + $0x4c] ss:$12 sps:$4 sm:$0xff]   ;;  %v2985_v27 = vld [vmem:[#allocation8 + $0x50] ss:$12 sps:$4 sm:$0xff]  }
 0x594   :  { %2273 = vpow2.f32 %v1844_v31  ;;  %v2988_v31 = vld [vmem:[#allocation8 + $0x64] ss:$12 sps:$4 sm:$0xff]  }
 0x595   :  { %2275 = vpow2.f32 %v1846_v32  ;;  %v2992_v32 = vld [vmem:[#allocation8 + $0x60] ss:$12 sps:$4 sm:$0xff]  }
 0x59c   :  { %v2270_v34 = vpop.eup %2269 }
 0x59d   :  { %v2272_v30 = vpop.eup %2271  ;;  %v1219_v4 = vadd.f32 1.0, %v2270_v34  ;;  %v2995_v34 = vld [vmem:[#allocation8 + $0x68] ss:$12 sps:$4 sm:$0xff]  }
 0x59e   :  { %v2274_v33 = vpop.eup %2273  ;;  %v1221_v52 = vadd.f32 1.0, %v2272_v30  ;;  %v2998_v30 = vld [vmem:[#allocation8 + $0x7c] ss:$12 sps:$4 sm:$0xff]  }
 0x59f   :  { %v2276_v55 = vpop.eup %2275  ;;  %2277 = vrcp.f32 %v1219_v4  ;;  %v1220_v59 = vadd.f32 1.0, %v2274_v33  ;;  %v3002_v4 = vld [vmem:[#allocation8 + $0x78] ss:$12 sps:$4 sm:$0xff]   ;;  %v3005_v33 = vld [vmem:[#allocation8 + $0x80] ss:$12 sps:$4 sm:$0xff]  }
 0x5a0   :  { %2279 = vrcp.f32 %v1221_v52  ;;  %v1222_v57 = vadd.f32 1.0, %v2276_v55  ;;  %v3008_v52 = vld [vmem:[#allocation8 + $0x94] ss:$12 sps:$4 sm:$0xff]   ;;  %v3012_v55 = vld [vmem:[#allocation8 + $0x90] ss:$12 sps:$4 sm:$0xff]  }
 0x5a1   :  { %2281 = vrcp.f32 %v1220_v59  ;;  %v3015_v59 = vld [vmem:[#allocation8 + $0x98] ss:$12 sps:$4 sm:$0xff]  }
 0x5a2   :  { %2283 = vrcp.f32 %v1222_v57  ;;  %v3018_v57 = vld [vmem:[#allocation8 + $0xac] ss:$12 sps:$4 sm:$0xff]  }
 0x5a9   :  { %v2278_v18 = vpop.eup %2277 }
 0x5aa   :  { %v2280_v62 = vpop.eup %2279  ;;  %v1236_v14 = vmul.f32 %v2278_v18, %v1232_v28  ;;  %v3025_v28 = vld [vmem:[#allocation8 + $0xb0] ss:$12 sps:$4 sm:$0xff]  }
 0x5ab   :  { %v2282_v15 = vpop.eup %2281  ;;  %v1237_v63 = vmul.f32 %v2280_v62, %v1233_v25 }
 0x5ac   :  { %v2284_v3 = vpop.eup %2283  ;;  %v1238_v11 = vadd.f32 %v1236_v14, %v2710_v22  ;;  %v1252_v13 = vmul.f32 %v2282_v15, %v1248_v61  ;;  %v1242_v37 = vsub.f32 1.0, %v2282_v15 }
 0x5ad   :  { %v1239_v7 = vadd.f32 %v1237_v63, %v2712_v2  ;;  %v1253_v58 = vmul.f32 %v2284_v3, %v1249_v20  ;;  %v1243_v39 = vsub.f32 1.0, %v2284_v3 }
 0x5ae   :  { %2285 = vtanh.f32 %v1238_v11 }
 0x5af   :  { %2287 = vtanh.f32 %v1239_v7 }
 0x5b8   :  { %v2286_v38 = vpop.eup %2285 }
 0x5b9   :  { %v2288_v40 = vpop.eup %2287  ;;  %v1244_v41 = vmul.f32 %v2286_v38, %v1242_v37 }
 0x5ba   :  { %v1245_v6 = vmul.f32 %v2288_v40, %v1243_v39 }
 0x5bb   :  { %v2950_v42 = vadd.f32 %v1252_v13, %v1244_v41 }
 0x5bc   :  { %v2952_v43 = vadd.f32 %v1253_v58, %v1245_v6 }
 0x5bd   :  { %v1256_v56 = vpack.c.bf16 %v2950_v42, %v2950_v42 }
 0x5be   :  { %v1257_v44 = vpack.c.bf16 %v2952_v43, %v2952_v43 }
 0x5bf   :  { %v1260_v45 = vunpack.c.l.b16 %v1256_v56 }
 0x5c0   :  { %v1261_v46 = vunpack.c.l.b16 %v1257_v44 }
 0x5c1   :  { %v1262_v47 = vrot.slane %v1260_v45, 4 }
 0x5c2   :  { %v1263_v48 = vrot.slane %v1261_v46, 3 }
 0x5c4   :  { %v1264_v49 = vsel %vm647_vm3, %v1263_v48, %v1262_v47 }
 0x5c5   :  { %v1265_v51 = vpack.c.b16 %v1264_v49, %v1264_v49 }
 0x5c7   :  { %1300 = vmatmul.mubr.bf16.vlgmr.msra.gmra.mrb[24].mxu0 %v1265_v51  ;;  %2077 = vmatmul.mubr.bf16.vlgmr.msra.gmra.mrb[24].mxu1 %v1265_v51 }
 0x5c8   :  { %1423 = vmatpush1.bf16.msra.mxu0 %v2892_v50  ;;  %2081 = vmatpush3.bf16.msra.mxu1 %v2960_v53 }
 0x5c9   :  { %1424 = vmatprep.subr.bf16.mxu0 %v2896_v16  ;;  %2082 = vmatprep.subr.bf16.mxu1 %v2458_v0 }
 0x5ca   :  { %1454 = vmatprep.mubr.bf16.mxu0 %v2459_v1  ;;  %2096 = vmatprep.mubr.msk.bf16.mxu1 %vm2460_vm0, %v2458_v0 }
 0x5cc   :  { %1425 = vmatpush1.bf16.msra.mxu0 %v2903_v19  ;;  %2083 = vmatpush3.bf16.msra.mxu1 %v2969_v54 }
 0x5cd   :  { %1426 = vmatprep.subr.bf16.mxu0 %v2907_v23  ;;  %2084 = vmatprep.subr.bf16.mxu1 %v2458_v0 }
 0x5d0   :  { %1427 = vmatpush1.bf16.msra.mxu0 %v2911_v35  ;;  %2085 = vmatpush3.bf16.msra.mxu1 %v2975_v24 }
 0x5d1   :  { %1428 = vmatprep.subr.bf16.mxu0 %v2978_v5  ;;  %2086 = vmatprep.subr.bf16.mxu1 %v2458_v0 }
 0x5d4   :  { %1429 = vmatpush1.bf16.msra.mxu0 %v2982_v29  ;;  %2087 = vmatpush3.bf16.msra.mxu1 %v2985_v27 }
 0x5d5   :  { %1430 = vmatprep.subr.bf16.mxu0 %v2988_v31  ;;  %2088 = vmatprep.subr.bf16.mxu1 %v2458_v0 }
 0x5d8   :  { %1431 = vmatpush1.bf16.msra.mxu0 %v2992_v32  ;;  %2089 = vmatpush3.bf16.msra.mxu1 %v2995_v34 }
 0x5d9   :  { %1432 = vmatprep.subr.bf16.mxu0 %v2998_v30  ;;  %2090 = vmatprep.subr.bf16.mxu1 %v2458_v0 }
 0x5dc   :  { %1433 = vmatpush1.bf16.msra.mxu0 %v3002_v4  ;;  %2091 = vmatpush3.bf16.msra.mxu1 %v3005_v33 }
 0x5dd   :  { %1434 = vmatprep.subr.bf16.mxu0 %v3008_v52  ;;  %2092 = vmatprep.subr.bf16.mxu1 %v2458_v0 }
 0x5e0   :  { %1435 = vmatpush1.bf16.msra.mxu0 %v3012_v55  ;;  %2093 = vmatpush3.bf16.msra.mxu1 %v3015_v59 }
 0x5e1   :  { %1436 = vmatprep.subr.bf16.mxu0 %v3018_v57  ;;  %2094 = vmatprep.subr.bf16.mxu1 %v2458_v0 }
 0x5e4   :  { %1437 = vmatpush1.bf16.msra.mxu0 %v3022_v60  ;;  %2095 = vmatpush3.bf16.msra.mxu1 %v3025_v28 }
 0x5e5   :  { %1577 = vmatprep.subr.bf16.mxu0 %v2935_v36  ;;  %2100 = vmatprep.subr.bf16.mxu1 %v2458_v0 }
 0x69a   :  { %v1301_v18 = vpop.f32.mrb[24].mxu0  ;;  %v1342_v25 = vpop.f32.mrb[24].mxu1 }
 0x69b   :  { %v1302_v62 = vadd.f32 %v1301_v18, %v2689_v8  ;;  %v1303_v61 = vpop.f32.mrb[25].mxu0  ;;  %v2078_v14 = vpop.f32.mrb[25].mxu1 }
 0x69c   :  { %v1304_v15 = vadd.f32 %v1303_v61, %v2691_v9  ;;  %v1305_v20 = vpop.f32.mrb[26].mxu0  ;;  %v1345_v63 = vpop.f32.mrb[26].mxu1  ;;  %v1343_v61 = vadd.f32 %v1342_v25, %v2707_v10 }
 0x69d   :  { %v1350_v3 = vrot.slane %v1302_v62, 3  ;;  %v1352_v11 = vrot.slane %v1302_v62, 4  ;;  %v1306_v13 = vpop.f32.mrb[27].mxu0  ;;  %v2079_v7 = vpop.f32.mrb[27].mxu1 }
 0x69e   :  { %v1351_v58 = vrot.slane %v1304_v15, 3  ;;  %v1353_v37 = vrot.slane %v1304_v15, 4  ;;  %v1387_v14 = vrot.slane %v1343_v61, 3  ;;  %v1388_v20 = vrot.slane %v1343_v61, 4 }
 0x69f   :  { %v1358_v36 = vadd.f32 %v1350_v3, %v2693_v12  ;;  %v1360_v38 = vadd.f32 %v1352_v11, %v2697_v17  ;;  %v1403_v3 = vrot.slane %v2950_v42, 7  ;;  %v1404_v7 = vrot.slane %v2952_v43, 7 }
 0x6a0   :  { %v1359_v39 = vadd.f32 %v1351_v58, %v2700_v21  ;;  %v1361_v40 = vadd.f32 %v1353_v37, %v2703_v26 }
 0x6a1   :  { %v1847_v41 = vmul.f32 -1.442695, %v1358_v36  ;;  %v1849_v6 = vmul.f32 -1.442695, %v1360_v38 }
 0x6a2   :  { %v1848_v56 = vmul.f32 -1.442695, %v1359_v39  ;;  %v1850_v44 = vmul.f32 -1.442695, %v1361_v40 }
 0x6a3   :  { %2289 = vpow2.f32 %v1847_v41 }
 0x6a4   :  { %2291 = vpow2.f32 %v1849_v6 }
 0x6a5   :  { %2293 = vpow2.f32 %v1848_v56 }
 0x6a6   :  { %2295 = vpow2.f32 %v1850_v44 }
 0x6ad   :  { %v2290_v45 = vpop.eup %2289 }
 0x6ae   :  { %v2292_v46 = vpop.eup %2291  ;;  %v1374_v47 = vadd.f32 1.0, %v2290_v45 }
 0x6af   :  { %v2294_v48 = vpop.eup %2293  ;;  %v1376_v49 = vadd.f32 1.0, %v2292_v46 }
 0x6b0   :  { %v2296_v51 = vpop.eup %2295  ;;  %2297 = vrcp.f32 %v1374_v47  ;;  %v1375_v18 = vadd.f32 1.0, %v2294_v48 }
 0x6b1   :  { %2299 = vrcp.f32 %v1376_v49  ;;  %v1377_v62 = vadd.f32 1.0, %v2296_v51 }
 0x6b2   :  { %2301 = vrcp.f32 %v1375_v18 }
 0x6b3   :  { %2303 = vrcp.f32 %v1377_v62 }
 0x6ba   :  { %v2298_v15 = vpop.eup %2297 }
 0x6bb   :  { %v2300_v63 = vpop.eup %2299  ;;  %v1391_v11 = vmul.f32 %v2298_v15, %v1387_v14 }
 0x6bc   :  { %v2302_v13 = vpop.eup %2301  ;;  %v1392_v58 = vmul.f32 %v2300_v63, %v1388_v20 }
 0x6bd   :  { %v2304_v37 = vpop.eup %2303  ;;  %v1393_v36 = vadd.f32 %v1391_v11, %v2710_v22  ;;  %v1407_v38 = vmul.f32 %v2302_v13, %v1403_v3  ;;  %v1397_v25 = vsub.f32 1.0, %v2302_v13 }
 0x6be   :  { %v1394_v39 = vadd.f32 %v1392_v58, %v2712_v2  ;;  %v1408_v40 = vmul.f32 %v2304_v37, %v1404_v7  ;;  %v1398_v6 = vsub.f32 1.0, %v2304_v37 }
 0x6bf   :  { %2305 = vtanh.f32 %v1393_v36 }
 0x6c0   :  { %2307 = vtanh.f32 %v1394_v39 }
 0x6c9   :  { %v2306_v41 = vpop.eup %2305 }
 0x6ca   :  { %v2308_v56 = vpop.eup %2307  ;;  %v1399_v44 = vmul.f32 %v2306_v41, %v1397_v25 }
 0x6cb   :  { %v1400_v42 = vmul.f32 %v2308_v56, %v1398_v6 }
 0x6cc   :  { %v3041_v45 = vadd.f32 %v1407_v38, %v1399_v44 }
 0x6cd   :  { %v3043_v46 = vadd.f32 %v1408_v40, %v1400_v42 }
 0x6ce   :  { %v1411_v43 = vpack.c.bf16 %v3041_v45, %v3041_v45  ;;  %v1558_v36 = vrot.slane %v3041_v45, 7 }
 0x6cf   :  { %v1412_v47 = vpack.c.bf16 %v3043_v46, %v3043_v46  ;;  %v1559_v40 = vrot.slane %v3043_v46, 7 }
 0x6d0   :  { %v1415_v48 = vunpack.c.l.b16 %v1411_v43 }
 0x6d1   :  { %v1416_v49 = vunpack.c.l.b16 %v1412_v47 }
 0x6d2   :  { %v1417_v51 = vrot.slane %v1415_v48, 5 }
 0x6d3   :  { %v1418_v18 = vrot.slane %v1416_v49, 4 }
 0x6d5   :  { %v1419_v62 = vsel %vm647_vm3, %v1418_v18, %v1417_v51 }
 0x6d6   :  { %v1420_v61 = vpack.c.b16 %v1419_v62, %v1419_v62 }
 0x6d8   :  { %1455 = vmatmul.mubr.bf16.vlgmr.msra.gmra.mrb[28].mxu0 %v1420_v61  ;;  %2097 = vmatmul.mubr.bf16.vlgmr.msra.gmra.mrb[28].mxu1 %v1420_v61 }
 0x6d9   :  { %1578 = vmatpush1.bf16.msra.mxu0 %v2892_v50  ;;  %2101 = vmatpush3.bf16.msra.mxu1 %v2960_v53 }
 0x6da   :  { %1579 = vmatprep.subr.bf16.mxu0 %v2896_v16  ;;  %2102 = vmatprep.subr.bf16.mxu1 %v2458_v0 }
 0x6db   :  { %1609 = vmatprep.mubr.bf16.mxu0 %v2459_v1  ;;  %2116 = vmatprep.mubr.msk.bf16.mxu1 %vm2460_vm0, %v2458_v0 }
 0x6dd   :  { %1580 = vmatpush1.bf16.msra.mxu0 %v2903_v19  ;;  %2103 = vmatpush3.bf16.msra.mxu1 %v2969_v54 }
 0x6de   :  { %1581 = vmatprep.subr.bf16.mxu0 %v2907_v23  ;;  %2104 = vmatprep.subr.bf16.mxu1 %v2458_v0 }
 0x6e1   :  { %1582 = vmatpush1.bf16.msra.mxu0 %v2911_v35  ;;  %2105 = vmatpush3.bf16.msra.mxu1 %v2975_v24 }
 0x6e2   :  { %1583 = vmatprep.subr.bf16.mxu0 %v2978_v5  ;;  %2106 = vmatprep.subr.bf16.mxu1 %v2458_v0 }
 0x6e5   :  { %1584 = vmatpush1.bf16.msra.mxu0 %v2982_v29  ;;  %2107 = vmatpush3.bf16.msra.mxu1 %v2985_v27 }
 0x6e6   :  { %1585 = vmatprep.subr.bf16.mxu0 %v2988_v31  ;;  %2108 = vmatprep.subr.bf16.mxu1 %v2458_v0 }
 0x6e9   :  { %1586 = vmatpush1.bf16.msra.mxu0 %v2992_v32  ;;  %2109 = vmatpush3.bf16.msra.mxu1 %v2995_v34 }
 0x6ea   :  { %1587 = vmatprep.subr.bf16.mxu0 %v2998_v30  ;;  %2110 = vmatprep.subr.bf16.mxu1 %v2458_v0 }
 0x6ed   :  { %1588 = vmatpush1.bf16.msra.mxu0 %v3002_v4  ;;  %2111 = vmatpush3.bf16.msra.mxu1 %v3005_v33 }
 0x6ee   :  { %1589 = vmatprep.subr.bf16.mxu0 %v3008_v52  ;;  %2112 = vmatprep.subr.bf16.mxu1 %v2458_v0 }
 0x6f1   :  { %1590 = vmatpush1.bf16.msra.mxu0 %v3012_v55  ;;  %2113 = vmatpush3.bf16.msra.mxu1 %v3015_v59 }
 0x6f2   :  { %1591 = vmatprep.subr.bf16.mxu0 %v3018_v57  ;;  %2114 = vmatprep.subr.bf16.mxu1 %v2458_v0 }
 0x6f5   :  { %1592 = vmatpush1.bf16.msra.mxu0 %v3022_v60  ;;  %2115 = vmatpush3.bf16.msra.mxu1 %v3025_v28 }
 0x7ab   :  { %v1456_v1 = vpop.f32.mrb[28].mxu0  ;;  %v1497_v50 = vpop.f32.mrb[28].mxu1 }
 0x7ac   :  { %v1457_v16 = vadd.f32 %v1456_v1, %v2689_v8  ;;  %v1458_v19 = vpop.f32.mrb[29].mxu0  ;;  %v2098_v23 = vpop.f32.mrb[29].mxu1  ;;  %v1498_v11 = vadd.f32 %v1497_v50, %v2707_v10 }
 0x7ad   :  { %v1459_v35 = vadd.f32 %v1458_v19, %v2691_v9  ;;  %v1460_v53 = vpop.f32.mrb[30].mxu0  ;;  %v1500_v54 = vpop.f32.mrb[30].mxu1 }
 0x7ae   :  { %v1505_v24 = vrot.slane %v1457_v16, 2  ;;  %v1507_v5 = vrot.slane %v1457_v16, 3  ;;  %v1461_v29 = vpop.f32.mrb[31].mxu0  ;;  %v2099_v27 = vpop.f32.mrb[31].mxu1  ;;  %v1542_v13 = vrot.slane %v1498_v11, 2  ;;  %v1543_v58 = vrot.slane %v1498_v11, 3 }
 0x7af   :  { %v1506_v31 = vrot.slane %v1459_v35, 2  ;;  %v1508_v0 = vrot.slane %v1459_v35, 3 }
 0x7b0   :  { %v1513_v32 = vadd.f32 %v1505_v24, %v2693_v12  ;;  %v1515_v34 = vadd.f32 %v1507_v5, %v2697_v17 }
 0x7b1   :  { %v1514_v30 = vadd.f32 %v1506_v31, %v2700_v21  ;;  %v1516_v4 = vadd.f32 %v1508_v0, %v2703_v26 }
 0x7b2   :  { %v1851_v33 = vmul.f32 -1.442695, %v1513_v32  ;;  %v1853_v52 = vmul.f32 -1.442695, %v1515_v34 }
 0x7b3   :  { %v1852_v55 = vmul.f32 -1.442695, %v1514_v30  ;;  %v1854_v59 = vmul.f32 -1.442695, %v1516_v4 }
 0x7b4   :  { %2309 = vpow2.f32 %v1851_v33 }
 0x7b5   :  { %2311 = vpow2.f32 %v1853_v52 }
 0x7b6   :  { %2313 = vpow2.f32 %v1852_v55 }
 0x7b7   :  { %2315 = vpow2.f32 %v1854_v59 }
 0x7be   :  { %v2310_v57 = vpop.eup %2309 }
 0x7bf   :  { %v2312_v60 = vpop.eup %2311  ;;  %v1529_v28 = vadd.f32 1.0, %v2310_v57 }
 0x7c0   :  { %v2314_v14 = vpop.eup %2313  ;;  %v1531_v15 = vadd.f32 1.0, %v2312_v60 }
 0x7c1   :  { %v2316_v20 = vpop.eup %2315  ;;  %2317 = vrcp.f32 %v1529_v28  ;;  %v1530_v63 = vadd.f32 1.0, %v2314_v14 }
 0x7c2   :  { %2319 = vrcp.f32 %v1531_v15  ;;  %v1532_v3 = vadd.f32 1.0, %v2316_v20 }
 0x7c3   :  { %2321 = vrcp.f32 %v1530_v63 }
 0x7c4   :  { %2323 = vrcp.f32 %v1532_v3 }
 0x7cb   :  { %v2318_v7 = vpop.eup %2317 }
 0x7cc   :  { %v2320_v37 = vpop.eup %2319  ;;  %v1546_v38 = vmul.f32 %v2318_v7, %v1542_v13 }
 0x7cd   :  { %v2322_v39 = vpop.eup %2321  ;;  %v1547_v25 = vmul.f32 %v2320_v37, %v1543_v58 }
 0x7ce   :  { %v2324_v41 = vpop.eup %2323  ;;  %v1548_v6 = vadd.f32 %v1546_v38, %v2710_v22  ;;  %v1562_v56 = vmul.f32 %v2322_v39, %v1558_v36  ;;  %v1552_v43 = vsub.f32 1.0, %v2322_v39 }
 0x7cf   :  { %v1549_v44 = vadd.f32 %v1547_v25, %v2712_v2  ;;  %v1563_v42 = vmul.f32 %v2324_v41, %v1559_v40  ;;  %v1553_v48 = vsub.f32 1.0, %v2324_v41 }
 0x7d0   :  { %2325 = vtanh.f32 %v1548_v6 }
 0x7d1   :  { %2327 = vtanh.f32 %v1549_v44 }
 0x7da   :  { %v2326_v47 = vpop.eup %2325 }
 0x7db   :  { %v2328_v49 = vpop.eup %2327  ;;  %v1554_v51 = vmul.f32 %v2326_v47, %v1552_v43 }
 0x7dc   :  { %v1555_v45 = vmul.f32 %v2328_v49, %v1553_v48 }
 0x7dd   :  { %v3094_v18 = vadd.f32 %v1562_v56, %v1554_v51  ;;  %v1859_v51 = vld [vmem:[%s3131_s5] ss:$0 sm:$0xff] }
 0x7de   :  { %v3096_v62 = vadd.f32 %v1563_v42, %v1555_v45 }
 0x7df   :  { %v1566_v46 = vpack.c.bf16 %v3094_v18, %v3094_v18  ;;  %v1713_v38 = vrot.slane %v3094_v18, 7 }
 0x7e0   :  { %v1567_v61 = vpack.c.bf16 %v3096_v62, %v3096_v62  ;;  %v1714_v25 = vrot.slane %v3096_v62, 7 }
 0x7e1   :  { %v1570_v1 = vunpack.c.l.b16 %v1566_v46 }
 0x7e2   :  { %v1571_v50 = vunpack.c.l.b16 %v1567_v61 }
 0x7e3   :  { %v1572_v16 = vrot.slane %v1570_v1, 6 }
 0x7e4   :  { %v1573_v19 = vrot.slane %v1571_v50, 5 }
 0x7e6   :  { %v1574_v23 = vsel %vm647_vm3, %v1573_v19, %v1572_v16  ;;  %v1754_v16 = vstv %s3132_s6 }
 0x7e7   :  { %v1575_v35 = vpack.c.b16 %v1574_v23, %v1574_v23 }
 0x7e9   :  { %1610 = vmatmul.mubr.bf16.vlgmr.msra.gmra.mrb[32].mxu0 %v1575_v35  ;;  %2117 = vmatmul.mubr.bf16.vlgmr.msra.gmra.mrb[32].mxu1 %v1575_v35 }
 0x8bc   :  { %v1611_v53 = vpop.f32.mrb[32].mxu0  ;;  %v1652_v54 = vpop.f32.mrb[32].mxu1 }
 0x8bd   :  { %v1612_v24 = vadd.f32 %v1611_v53, %v2689_v8  ;;  %v1613_v5 = vpop.f32.mrb[33].mxu0  ;;  %v2118_v29 = vpop.f32.mrb[33].mxu1 }
 0x8be   :  { %v1614_v27 = vadd.f32 %v1613_v5, %v2691_v9  ;;  %v1615_v31 = vpop.f32.mrb[34].mxu0  ;;  %v1655_v0 = vpop.f32.mrb[34].mxu1 }
 0x8bf   :  { %v1660_v32 = vrot.slane %v1612_v24, 1  ;;  %v1662_v34 = vrot.slane %v1612_v24, 2  ;;  %v1616_v30 = vpop.f32.mrb[35].mxu0  ;;  %v2119_v4 = vpop.f32.mrb[35].mxu1 }
 0x8c0   :  { %v1661_v33 = vrot.slane %v1614_v27, 1  ;;  %v1663_v52 = vrot.slane %v1614_v27, 2 }
 0x8c1   :  { %v1668_v55 = vadd.f32 %v1660_v32, %v2693_v12  ;;  %v1670_v59 = vadd.f32 %v1662_v34, %v2697_v17 }
 0x8c2   :  { %v1669_v57 = vadd.f32 %v1661_v33, %v2700_v21  ;;  %v1671_v8 = vadd.f32 %v1663_v52, %v2703_v26  ;;  %v1653_v26 = vadd.f32 %v1652_v54, %v2707_v10 }
 0x8c3   :  { %v1855_v60 = vmul.f32 -1.442695, %v1668_v55  ;;  %v1857_v28 = vmul.f32 -1.442695, %v1670_v59 }
 0x8c4   :  { %v1856_v14 = vmul.f32 -1.442695, %v1669_v57  ;;  %v1858_v9 = vmul.f32 -1.442695, %v1671_v8  ;;  %v1697_v13 = vrot.slane %v1653_v26, 1  ;;  %v1698_v58 = vrot.slane %v1653_v26, 2 }
 0x8c5   :  { %2329 = vpow2.f32 %v1855_v60 }
 0x8c6   :  { %2331 = vpow2.f32 %v1857_v28 }
 0x8c7   :  { %2333 = vpow2.f32 %v1856_v14 }
 0x8c8   :  { %2335 = vpow2.f32 %v1858_v9 }
 0x8cf   :  { %v2330_v15 = vpop.eup %2329 }
 0x8d0   :  { %v2332_v20 = vpop.eup %2331  ;;  %v1684_v63 = vadd.f32 1.0, %v2330_v15 }
 0x8d1   :  { %v2334_v3 = vpop.eup %2333  ;;  %v1686_v11 = vadd.f32 1.0, %v2332_v20 }
 0x8d2   :  { %v2336_v12 = vpop.eup %2335  ;;  %2337 = vrcp.f32 %v1684_v63  ;;  %v1685_v17 = vadd.f32 1.0, %v2334_v3 }
 0x8d3   :  { %2339 = vrcp.f32 %v1686_v11  ;;  %v1687_v21 = vadd.f32 1.0, %v2336_v12 }
 0x8d4   :  { %2341 = vrcp.f32 %v1685_v17 }
 0x8d5   :  { %2343 = vrcp.f32 %v1687_v21 }
 0x8dc   :  { %v2338_v7 = vpop.eup %2337 }
 0x8dd   :  { %v2340_v37 = vpop.eup %2339  ;;  %v1701_v36 = vmul.f32 %v2338_v7, %v1697_v13 }
 0x8de   :  { %v2342_v39 = vpop.eup %2341  ;;  %v1702_v40 = vmul.f32 %v2340_v37, %v1698_v58 }
 0x8df   :  { %v2344_v41 = vpop.eup %2343  ;;  %v1703_v6 = vadd.f32 %v1701_v36, %v2710_v22  ;;  %v1717_v56 = vmul.f32 %v2342_v39, %v1713_v38  ;;  %v1707_v10 = vsub.f32 1.0, %v2342_v39 }
 0x8e0   :  { %v1704_v44 = vadd.f32 %v1702_v40, %v2712_v2  ;;  %v1718_v42 = vmul.f32 %v2344_v41, %v1714_v25  ;;  %v1708_v47 = vsub.f32 1.0, %v2344_v41 }
 0x8e1   :  { %2345 = vtanh.f32 %v1703_v6 }
 0x8e2   :  { %2347 = vtanh.f32 %v1704_v44 }
 0x8eb   :  { %v2346_v43 = vpop.eup %2345 }
 0x8ec   :  { %v2348_v48 = vpop.eup %2347  ;;  %v1709_v49 = vmul.f32 %v2346_v43, %v1707_v10 }
 0x8ed   :  { %v1710_v45 = vmul.f32 %v2348_v48, %v1708_v47 }
 0x8ee   :  { %v1719_v18 = vadd.f32 %v1717_v56, %v1709_v49 }
 0x8ef   :  { %v1720_v62 = vadd.f32 %v1718_v42, %v1710_v45 }
 0x8f0   :  { %v1738_v22 = vmul.f32 %v1859_v51, %v1719_v18  ;;  %1726 = vst [vmem:[#allocation2 - $0x7] sm:$0x80] %v1719_v18 }
 0x8f1   :  { %v1723_v46 = vrot.slane %v1720_v62, 7  ;;  %v1739_v2 = vmul.f32 %v1859_v51, %v1720_v62 }
 0x8f2   :  { %v1746_v61 = vsel %vm1745_vm4, %v1738_v22, 0.0 }
 0x8f3   :  { %1747 = vadd.xlane.f32.xlu0 %v1746_v61  ;;  %1727 = vst [vmem:[#allocation2 + $0x1] sm:$0x1] %v1723_v46  ;;  %v1742_v1 = vrot.slane %v1739_v2, 7 }
 0x8f5   :  { %v1750_v50 = vsel %vm1749_vm5, %v1742_v1, 0.0 }
 0x8f7   :  { %1751 = vadd.xlane.f32.xlu0 %v1750_v50 }
 0x980   :  { %v1748_v19 = vpop.xlane.xlu0 %1747 }
 0x981   :  { %v1755_v23 = vadd.f32 %v1754_v16, %v1748_v19 }
 0x983   :  { %v1860_v35 = vmul.f32 -1.442695, %v1755_v23 }
 0x984   :  { %v1752_v53 = vpop.xlane.xlu0 %1751 }
 0x985   :  { %2349 = vpow2.f32 %v1860_v35  ;;  %v1756_v54 = vadd.f32 %v1754_v16, %v1752_v53 }
 0x987   :  { %v1861_v24 = vmul.f32 -1.442695, %v1756_v54 }
 0x989   :  { %2351 = vpow2.f32 %v1861_v24 }
 0x98f   :  { %v2350_v5 = vpop.eup %2349 }
 0x990   :  { %v1763_v29 = vadd.f32 1.0, %v2350_v5 }
 0x992   :  { %2353 = vrcp.f32 %v1763_v29 }
 0x993   :  { %v2352_v27 = vpop.eup %2351 }
 0x994   :  { %v1764_v31 = vadd.f32 1.0, %v2352_v27 }
 0x996   :  { %2355 = vrcp.f32 %v1764_v31 }
 0x99c   :  { %v2354_v0 = vpop.eup %2353 }
 0x99d   :  { %1770 = vst.msk [vmem:[%s3133_s7 - $0x7] sm:$0x80] %vm1769_vm6, %v2354_v0 }
 0x9a0   :  { %v2356_v32 = vpop.eup %2355 }
 0x9a1   :  { %1772 = vst.msk [vmem:[%s3133_s7 + $0x1] sm:$0x1] %vm1771_vm7, %v2356_v32 }
 0x9a2   :  { %1777 = vsyncpa [#allocation5], 1 }
 0x9a3   :  { %1778 = vsyncpa [#allocation7], 1 }

</bundles_post_ra>
